<compile_context>
chip_gen: v7x
topology: tpu7x:2x2x1
jax: 0.10.0
libtpu: 0.0.40
codegen_flags: <defaults>
</compile_context>

<pallas_src>
import jax
import jax.numpy as jnp
from jax import lax
from jax.experimental import pallas as pl
from jax.experimental.pallas import tpu as pltpu

REP_DIM = 512       # resnet.rep_dim (instance projector input is 512 => rep_dim = 512)
HID_DIM = 512
OUT_DIM = 128
CLASS_NUM = 10
PAD_CLASS = 128     # lane-dense padded cluster output; sliced back to CLASS_NUM outside
BN_EPS = 1e-5
NORM_EPS = 1e-12


def _heads_kernel(h_ref,
                  w1c1_ref, b1c1_ref, g1_ref, be1_ref,
                  w2_ref, b2_ref, g2_ref, be2_ref,
                  w3_ref, b3_ref, g3_ref, be3_ref,
                  wc2_ref, bc2_ref,
                  z_ref, c_ref):
    """One grid step == one view.  h_ref: (B, 512) bf16.  BN/norm/softmax math in f32."""
    h = h_ref[...]                                    # bf16 MXU operand
    inv_b = jnp.float32(1.0 / h.shape[0])

    def bn_train(x, gamma, beta):
        # BatchNorm1d in training mode: one-pass batch stats (biased var), folded scale/shift.
        mu = jnp.sum(x, axis=0, keepdims=True) * inv_b
        var = jnp.maximum(jnp.sum(x * x, axis=0, keepdims=True) * inv_b - mu * mu, 0.0)
        scale = gamma * lax.rsqrt(var + BN_EPS)
        shift = beta - mu * scale
        return x * scale + shift

    # Shared first matmul: [w1 | wc1] fused -> one (B,512)x(512,1024) MXU pass.
    t = jnp.dot(h, w1c1_ref[...], preferred_element_type=jnp.float32) + b1c1_ref[...]
    a = t[:, :HID_DIM]            # instance branch (pre-BN)
    cc = t[:, HID_DIM:]           # cluster branch  (pre-ReLU)

    # ---- instance projector: [Linear,BN,ReLU] x2 + [Linear,BN], then F.normalize(dim=1) ----
    a = jnp.maximum(bn_train(a, g1_ref[...], be1_ref[...]), 0.0)
    a = jnp.dot(a.astype(jnp.bfloat16), w2_ref[...],
                preferred_element_type=jnp.float32) + b2_ref[...]
    a = jnp.maximum(bn_train(a, g2_ref[...], be2_ref[...]), 0.0)
    a = jnp.dot(a.astype(jnp.bfloat16), w3_ref[...],
                preferred_element_type=jnp.float32) + b3_ref[...]
    a = bn_train(a, g3_ref[...], be3_ref[...])
    sumsq = jnp.sum(a * a, axis=1, keepdims=True)
    # x / max(||x||, eps)  ==  x * rsqrt(max(sumsq, eps^2))
    z_ref[...] = a * lax.rsqrt(jnp.maximum(sumsq, NORM_EPS * NORM_EPS))

    # ---- cluster projector: Linear -> ReLU -> Linear(padded to 128) -> Softmax(dim=1) ----
    cc = jnp.maximum(cc, 0.0)
    logits = jnp.dot(cc.astype(jnp.bfloat16), wc2_ref[...],
                     preferred_element_type=jnp.float32) + bc2_ref[...]   # (B, 128)
    lane = lax.broadcasted_iota(jnp.int32, logits.shape, 1)
    logits = jnp.where(lane < CLASS_NUM, logits, jnp.float32(-1e30))      # mask padded lanes
    logits = logits - jnp.max(logits, axis=1, keepdims=True)
    e = jnp.exp(logits)
    c_ref[...] = e * pl.reciprocal(jnp.sum(e, axis=1, keepdims=True), approx=True)


def heads_forward(h_stack, params):
    """h_stack: (2, B, 512) bf16  ->  (z (2,B,128) f32, c_padded (2,B,128) f32)."""
    V, B, _ = h_stack.shape

    def view_spec(d):
        return pl.BlockSpec((None, B, d), lambda v: (v, 0, 0))

    def const_spec(arr):          # constant block index -> weight resident across both views
        return pl.BlockSpec(arr.shape, lambda v: (0, 0))

    weights = (
        params["w1c1"], params["b1c1"], params["g1"], params["be1"],
        params["w2"], params["b2"], params["g2"], params["be2"],
        params["w3"], params["b3"], params["g3"], params["be3"],
        params["wc2"], params["bc2"],
    )
    z, c = pl.pallas_call(
        _heads_kernel,
        grid=(V,),
        in_specs=[view_spec(REP_DIM)] + [const_spec(w) for w in weights],
        out_specs=(view_spec(OUT_DIM), view_spec(PAD_CLASS)),
        out_shape=(
            jax.ShapeDtypeStruct((V, B, OUT_DIM), jnp.float32),
            jax.ShapeDtypeStruct((V, B, PAD_CLASS), jnp.float32),
        ),
        compiler_params=pltpu.CompilerParams(
            dimension_semantics=("parallel",)),   # one view per TensorCore on v7x
    )(h_stack, *weights)
    return z, c


# ---------------------------------------------------------------------------
# Parameter initialization (deterministic, PyTorch-Linear-like uniform init).
# Linear weights stored transposed as (in, out) so the kernel does x @ W; matmul
# weights stored bf16, BN params / biases stored f32.
# ---------------------------------------------------------------------------
def _linear_init(key, fan_in, fan_out):
    kw, kb = jax.random.split(key)
    bound = 1.0 / jnp.sqrt(jnp.float32(fan_in))
    w = jax.random.uniform(kw, (fan_in, fan_out), jnp.float32, -bound, bound)
    b = jax.random.uniform(kb, (1, fan_out), jnp.float32, -bound, bound)
    return w, b


def init_params(key):
    keys = jax.random.split(key, 8)
    p = {}
    # instance projector: 512 -> 512 -> 512 -> 128 (BN after every Linear)
    w1, b1 = _linear_init(keys[0], REP_DIM, HID_DIM)
    p["g1"], p["be1"] = jnp.ones((1, HID_DIM), jnp.float32), jnp.zeros((1, HID_DIM), jnp.float32)
    w2, b2 = _linear_init(keys[1], HID_DIM, HID_DIM)
    p["g2"], p["be2"] = jnp.ones((1, HID_DIM), jnp.float32), jnp.zeros((1, HID_DIM), jnp.float32)
    w3, b3 = _linear_init(keys[2], HID_DIM, OUT_DIM)
    p["g3"], p["be3"] = jnp.ones((1, OUT_DIM), jnp.float32), jnp.zeros((1, OUT_DIM), jnp.float32)
    # cluster projector: rep_dim -> rep_dim -> class_num
    wc1, bc1 = _linear_init(keys[3], REP_DIM, REP_DIM)
    wc2, bc2 = _linear_init(keys[4], REP_DIM, CLASS_NUM)

    # Fused first layer [w1 | wc1]: shared LHS h does one (512,1024) matmul.
    p["w1c1"] = jnp.concatenate([w1, wc1], axis=1).astype(jnp.bfloat16)   # (512, 1024) bf16
    p["b1c1"] = jnp.concatenate([b1, bc1], axis=1)                        # (1, 1024)   f32
    p["w2"], p["b2"] = w2.astype(jnp.bfloat16), b2
    p["w3"], p["b3"] = w3.astype(jnp.bfloat16), b3
    # Cluster output padded to 128 lanes (lane-dense stores); padded logits masked in-kernel.
    p["wc2"] = jnp.pad(wc2, ((0, 0), (0, PAD_CLASS - CLASS_NUM))).astype(jnp.bfloat16)
    p["bc2"] = jnp.pad(bc2, ((0, 0), (0, PAD_CLASS - CLASS_NUM)))
    # resnet stand-in: global-avg-pool + Linear(C -> rep_dim) + ReLU
    p["wr"], p["br"] = _linear_init(keys[5], 3, REP_DIM)
    return p


def resnet_standin(x, params):
    # TODO(synk): the real ResNet backbone is an external module passed to Network;
    # stand-in = global average pool over H,W + Linear(C, rep_dim) + ReLU (plain JAX glue).
    pooled = jnp.mean(x, axis=(2, 3))                                    # (B, C)
    return jnp.maximum(pooled @ params["wr"] + params["br"], 0.0)        # (B, 512) f32


@jax.jit
def network_forward(x_i, x_j, params):
    h_i = resnet_standin(x_i, params)
    h_j = resnet_standin(x_j, params)
    # Stack both views, cast once to bf16 (MXU operand) -> single fused heads kernel.
    h = jnp.stack([h_i, h_j], axis=0).astype(jnp.bfloat16)               # (2, B, 512)
    z, c_pad = heads_forward(h, params)
    z_i, z_j = z[0], z[1]
    c_i, c_j = c_pad[0, :, :CLASS_NUM], c_pad[1, :, :CLASS_NUM]
    return z_i, z_j, c_i, c_j


if __name__ == "__main__":
    key = jax.random.PRNGKey(0)
    kx, kp = jax.random.split(key)
    B, C, H, W = 8, 3, 16, 16
    x_i = jax.random.normal(kx, (B, C, H, W), jnp.float32)
    x_j = jax.random.normal(jax.random.fold_in(kx, 1), (B, C, H, W), jnp.float32)
    params = init_params(kp)

    z_i, z_j, c_i, c_j = network_forward(x_i, x_j, params)
    jax.block_until_ready((z_i, z_j, c_i, c_j))

    assert z_i.shape == (B, OUT_DIM) and z_j.shape == (B, OUT_DIM)
    assert c_i.shape == (B, CLASS_NUM) and c_j.shape == (B, CLASS_NUM)
    assert bool(jnp.all(jnp.isfinite(z_i)) and jnp.all(jnp.isfinite(c_i)))
    # sanity: z rows unit-norm (f32 normalize); c rows sum ~1 (bf16 matmul + approx EUP recip).
    assert jnp.allclose(jnp.linalg.norm(z_i, axis=1), 1.0, atol=1e-3)
    assert jnp.allclose(jnp.sum(c_i, axis=1), 1.0, atol=1e-2)
    print("KERNEL_OK")
</pallas_src>

<mosaic_0001>
module attributes {stable_mosaic.version = 11 : i64} {
  func.func @_heads_kernel(%arg0: i32, %arg1: memref<1x8x512xbf16, #tpu.memory_space<vmem>>, %arg2: memref<512x1024xbf16, #tpu.memory_space<vmem>>, %arg3: memref<1x1024xf32, #tpu.memory_space<vmem>>, %arg4: memref<1x512xf32, #tpu.memory_space<vmem>>, %arg5: memref<1x512xf32, #tpu.memory_space<vmem>>, %arg6: memref<512x512xbf16, #tpu.memory_space<vmem>>, %arg7: memref<1x512xf32, #tpu.memory_space<vmem>>, %arg8: memref<1x512xf32, #tpu.memory_space<vmem>>, %arg9: memref<1x512xf32, #tpu.memory_space<vmem>>, %arg10: memref<512x128xbf16, #tpu.memory_space<vmem>>, %arg11: memref<1x128xf32, #tpu.memory_space<vmem>>, %arg12: memref<1x128xf32, #tpu.memory_space<vmem>>, %arg13: memref<1x128xf32, #tpu.memory_space<vmem>>, %arg14: memref<512x128xbf16, #tpu.memory_space<vmem>>, %arg15: memref<1x128xf32, #tpu.memory_space<vmem>>, %arg16: memref<1x8x128xf32, #tpu.memory_space<vmem>>, %arg17: memref<1x8x128xf32, #tpu.memory_space<vmem>>) attributes {dimension_semantics = [#tpu.dimension_semantics<parallel>], iteration_bounds = array<i64: 2>, scalar_prefetch = 0 : i64, scratch_operands = 0 : i64, tpu.core_type = #tpu.core_type<tc>, window_params = [{transform_indices = @transform_0, window_bounds = array<i64: 1, 8, 512>}, {pipeline_mode = #tpu.pipeline_mode<synchronous>, transform_indices = @transform_1, window_bounds = array<i64: 512, 1024>}, {pipeline_mode = #tpu.pipeline_mode<synchronous>, transform_indices = @transform_2, window_bounds = array<i64: 1, 1024>}, {pipeline_mode = #tpu.pipeline_mode<synchronous>, transform_indices = @transform_3, window_bounds = array<i64: 1, 512>}, {pipeline_mode = #tpu.pipeline_mode<synchronous>, transform_indices = @transform_4, window_bounds = array<i64: 1, 512>}, {pipeline_mode = #tpu.pipeline_mode<synchronous>, transform_indices = @transform_5, window_bounds = array<i64: 512, 512>}, {pipeline_mode = #tpu.pipeline_mode<synchronous>, transform_indices = @transform_6, window_bounds = array<i64: 1, 512>}, {pipeline_mode = #tpu.pipeline_mode<synchronous>, transform_indices = @transform_7, window_bounds = array<i64: 1, 512>}, {pipeline_mode = #tpu.pipeline_mode<synchronous>, transform_indices = @transform_8, window_bounds = array<i64: 1, 512>}, {pipeline_mode = #tpu.pipeline_mode<synchronous>, transform_indices = @transform_9, window_bounds = array<i64: 512, 128>}, {pipeline_mode = #tpu.pipeline_mode<synchronous>, transform_indices = @transform_10, window_bounds = array<i64: 1, 128>}, {pipeline_mode = #tpu.pipeline_mode<synchronous>, transform_indices = @transform_11, window_bounds = array<i64: 1, 128>}, {pipeline_mode = #tpu.pipeline_mode<synchronous>, transform_indices = @transform_12, window_bounds = array<i64: 1, 128>}, {pipeline_mode = #tpu.pipeline_mode<synchronous>, transform_indices = @transform_13, window_bounds = array<i64: 512, 128>}, {pipeline_mode = #tpu.pipeline_mode<synchronous>, transform_indices = @transform_14, window_bounds = array<i64: 1, 128>}, {transform_indices = @transform_15, window_bounds = array<i64: 1, 8, 128>}, {transform_indices = @transform_16, window_bounds = array<i64: 1, 8, 128>}]} {
    %c0 = arith.constant 0 : index
    %c0_0 = arith.constant 0 : index
    %c0_1 = arith.constant 0 : index
    %0 = vector.load %arg1[%c0, %c0_0, %c0_1] : memref<1x8x512xbf16, #tpu.memory_space<vmem>>, vector<1x8x512xbf16>
    %1 = vector.shape_cast %0 : vector<1x8x512xbf16> to vector<8x512xbf16>
    %c0_2 = arith.constant 0 : index
    %c0_3 = arith.constant 0 : index
    %2 = vector.load %arg2[%c0_2, %c0_3] : memref<512x1024xbf16, #tpu.memory_space<vmem>>, vector<512x1024xbf16>
    %cst = arith.constant dense<0.000000e+00> : vector<8x1024xf32>
    %3 = tpu.matmul %1, %2, %cst {dimension_numbers = #tpu.dot_dimension_numbers<[1], [0], [0], [1], [0, 0, 1, 1], [], []>} : vector<8x512xbf16>, vector<512x1024xbf16>, vector<8x1024xf32> -> vector<8x1024xf32>
    %c0_4 = arith.constant 0 : index
    %c0_5 = arith.constant 0 : index
    %4 = vector.load %arg3[%c0_4, %c0_5] : memref<1x1024xf32, #tpu.memory_space<vmem>>, vector<1x1024xf32>
    %5 = vector.broadcast %4 : vector<1x1024xf32> to vector<8x1024xf32>
    %6 = arith.addf %3, %5 : vector<8x1024xf32>
    %7 = vector.extract_strided_slice %6 {offsets = [0, 0], sizes = [8, 512], strides = [1, 1]} : vector<8x1024xf32> to vector<8x512xf32>
    %8 = vector.extract_strided_slice %6 {offsets = [0, 512], sizes = [8, 512], strides = [1, 1]} : vector<8x1024xf32> to vector<8x512xf32>
    %c0_6 = arith.constant 0 : index
    %c0_7 = arith.constant 0 : index
    %9 = vector.load %arg4[%c0_6, %c0_7] : memref<1x512xf32, #tpu.memory_space<vmem>>, vector<1x512xf32>
    %c0_8 = arith.constant 0 : index
    %c0_9 = arith.constant 0 : index
    %10 = vector.load %arg5[%c0_8, %c0_9] : memref<1x512xf32, #tpu.memory_space<vmem>>, vector<1x512xf32>
    %cst_10 = arith.constant dense<0.000000e+00> : vector<512xf32>
    %11 = vector.multi_reduction <add>, %7, %cst_10 [0] : vector<8x512xf32> to vector<512xf32>
    %12 = vector.shape_cast %11 : vector<512xf32> to vector<1x512xf32>
    %cst_11 = arith.constant 1.250000e-01 : f32
    %13 = vector.broadcast %cst_11 : f32 to vector<1x512xf32>
    %14 = arith.mulf %12, %13 : vector<1x512xf32>
    %15 = arith.mulf %7, %7 : vector<8x512xf32>
    %cst_12 = arith.constant dense<0.000000e+00> : vector<512xf32>
    %16 = vector.multi_reduction <add>, %15, %cst_12 [0] : vector<8x512xf32> to vector<512xf32>
    %17 = vector.shape_cast %16 : vector<512xf32> to vector<1x512xf32>
    %cst_13 = arith.constant 1.250000e-01 : f32
    %18 = vector.broadcast %cst_13 : f32 to vector<1x512xf32>
    %19 = arith.mulf %17, %18 : vector<1x512xf32>
    %20 = arith.mulf %14, %14 : vector<1x512xf32>
    %21 = arith.subf %19, %20 : vector<1x512xf32>
    %cst_14 = arith.constant 0.000000e+00 : f32
    %22 = vector.broadcast %cst_14 : f32 to vector<1x512xf32>
    %23 = arith.maximumf %21, %22 : vector<1x512xf32>
    %cst_15 = arith.constant 9.99999974E-6 : f32
    %24 = vector.broadcast %cst_15 : f32 to vector<1x512xf32>
    %25 = arith.addf %23, %24 : vector<1x512xf32>
    %26 = math.rsqrt %25 : vector<1x512xf32>
    %27 = arith.mulf %9, %26 : vector<1x512xf32>
    %28 = arith.mulf %14, %27 : vector<1x512xf32>
    %29 = arith.subf %10, %28 : vector<1x512xf32>
    %30 = vector.broadcast %27 : vector<1x512xf32> to vector<8x512xf32>
    %31 = arith.mulf %7, %30 : vector<8x512xf32>
    %32 = vector.broadcast %29 : vector<1x512xf32> to vector<8x512xf32>
    %33 = arith.addf %31, %32 : vector<8x512xf32>
    %cst_16 = arith.constant 0.000000e+00 : f32
    %34 = vector.broadcast %cst_16 : f32 to vector<8x512xf32>
    %35 = arith.maximumf %33, %34 : vector<8x512xf32>
    %36 = arith.truncf %35 : vector<8x512xf32> to vector<8x512xbf16>
    %c0_17 = arith.constant 0 : index
    %c0_18 = arith.constant 0 : index
    %37 = vector.load %arg6[%c0_17, %c0_18] : memref<512x512xbf16, #tpu.memory_space<vmem>>, vector<512x512xbf16>
    %cst_19 = arith.constant dense<0.000000e+00> : vector<8x512xf32>
    %38 = tpu.matmul %36, %37, %cst_19 {dimension_numbers = #tpu.dot_dimension_numbers<[1], [0], [0], [1], [0, 0, 1, 1], [], []>} : vector<8x512xbf16>, vector<512x512xbf16>, vector<8x512xf32> -> vector<8x512xf32>
    %c0_20 = arith.constant 0 : index
    %c0_21 = arith.constant 0 : index
    %39 = vector.load %arg7[%c0_20, %c0_21] : memref<1x512xf32, #tpu.memory_space<vmem>>, vector<1x512xf32>
    %40 = vector.broadcast %39 : vector<1x512xf32> to vector<8x512xf32>
    %41 = arith.addf %38, %40 : vector<8x512xf32>
    %c0_22 = arith.constant 0 : index
    %c0_23 = arith.constant 0 : index
    %42 = vector.load %arg8[%c0_22, %c0_23] : memref<1x512xf32, #tpu.memory_space<vmem>>, vector<1x512xf32>
    %c0_24 = arith.constant 0 : index
    %c0_25 = arith.constant 0 : index
    %43 = vector.load %arg9[%c0_24, %c0_25] : memref<1x512xf32, #tpu.memory_space<vmem>>, vector<1x512xf32>
    %cst_26 = arith.constant dense<0.000000e+00> : vector<512xf32>
    %44 = vector.multi_reduction <add>, %41, %cst_26 [0] : vector<8x512xf32> to vector<512xf32>
    %45 = vector.shape_cast %44 : vector<512xf32> to vector<1x512xf32>
    %cst_27 = arith.constant 1.250000e-01 : f32
    %46 = vector.broadcast %cst_27 : f32 to vector<1x512xf32>
    %47 = arith.mulf %45, %46 : vector<1x512xf32>
    %48 = arith.mulf %41, %41 : vector<8x512xf32>
    %cst_28 = arith.constant dense<0.000000e+00> : vector<512xf32>
    %49 = vector.multi_reduction <add>, %48, %cst_28 [0] : vector<8x512xf32> to vector<512xf32>
    %50 = vector.shape_cast %49 : vector<512xf32> to vector<1x512xf32>
    %cst_29 = arith.constant 1.250000e-01 : f32
    %51 = vector.broadcast %cst_29 : f32 to vector<1x512xf32>
    %52 = arith.mulf %50, %51 : vector<1x512xf32>
    %53 = arith.mulf %47, %47 : vector<1x512xf32>
    %54 = arith.subf %52, %53 : vector<1x512xf32>
    %cst_30 = arith.constant 0.000000e+00 : f32
    %55 = vector.broadcast %cst_30 : f32 to vector<1x512xf32>
    %56 = arith.maximumf %54, %55 : vector<1x512xf32>
    %cst_31 = arith.constant 9.99999974E-6 : f32
    %57 = vector.broadcast %cst_31 : f32 to vector<1x512xf32>
    %58 = arith.addf %56, %57 : vector<1x512xf32>
    %59 = math.rsqrt %58 : vector<1x512xf32>
    %60 = arith.mulf %42, %59 : vector<1x512xf32>
    %61 = arith.mulf %47, %60 : vector<1x512xf32>
    %62 = arith.subf %43, %61 : vector<1x512xf32>
    %63 = vector.broadcast %60 : vector<1x512xf32> to vector<8x512xf32>
    %64 = arith.mulf %41, %63 : vector<8x512xf32>
    %65 = vector.broadcast %62 : vector<1x512xf32> to vector<8x512xf32>
    %66 = arith.addf %64, %65 : vector<8x512xf32>
    %cst_32 = arith.constant 0.000000e+00 : f32
    %67 = vector.broadcast %cst_32 : f32 to vector<8x512xf32>
    %68 = arith.maximumf %66, %67 : vector<8x512xf32>
    %69 = arith.truncf %68 : vector<8x512xf32> to vector<8x512xbf16>
    %c0_33 = arith.constant 0 : index
    %c0_34 = arith.constant 0 : index
    %70 = vector.load %arg10[%c0_33, %c0_34] : memref<512x128xbf16, #tpu.memory_space<vmem>>, vector<512x128xbf16>
    %cst_35 = arith.constant dense<0.000000e+00> : vector<8x128xf32>
    %71 = tpu.matmul %69, %70, %cst_35 {dimension_numbers = #tpu.dot_dimension_numbers<[1], [0], [0], [1], [0, 0, 1, 1], [], []>} : vector<8x512xbf16>, vector<512x128xbf16>, vector<8x128xf32> -> vector<8x128xf32>
    %c0_36 = arith.constant 0 : index
    %c0_37 = arith.constant 0 : index
    %72 = vector.load %arg11[%c0_36, %c0_37] : memref<1x128xf32, #tpu.memory_space<vmem>>, vector<1x128xf32>
    %73 = vector.broadcast %72 : vector<1x128xf32> to vector<8x128xf32>
    %74 = arith.addf %71, %73 : vector<8x128xf32>
    %c0_38 = arith.constant 0 : index
    %c0_39 = arith.constant 0 : index
    %75 = vector.load %arg12[%c0_38, %c0_39] : memref<1x128xf32, #tpu.memory_space<vmem>>, vector<1x128xf32>
    %c0_40 = arith.constant 0 : index
    %c0_41 = arith.constant 0 : index
    %76 = vector.load %arg13[%c0_40, %c0_41] : memref<1x128xf32, #tpu.memory_space<vmem>>, vector<1x128xf32>
    %cst_42 = arith.constant dense<0.000000e+00> : vector<128xf32>
    %77 = vector.multi_reduction <add>, %74, %cst_42 [0] : vector<8x128xf32> to vector<128xf32>
    %78 = vector.shape_cast %77 : vector<128xf32> to vector<1x128xf32>
    %cst_43 = arith.constant 1.250000e-01 : f32
    %79 = vector.broadcast %cst_43 : f32 to vector<1x128xf32>
    %80 = arith.mulf %78, %79 : vector<1x128xf32>
    %81 = arith.mulf %74, %74 : vector<8x128xf32>
    %cst_44 = arith.constant dense<0.000000e+00> : vector<128xf32>
    %82 = vector.multi_reduction <add>, %81, %cst_44 [0] : vector<8x128xf32> to vector<128xf32>
    %83 = vector.shape_cast %82 : vector<128xf32> to vector<1x128xf32>
    %cst_45 = arith.constant 1.250000e-01 : f32
    %84 = vector.broadcast %cst_45 : f32 to vector<1x128xf32>
    %85 = arith.mulf %83, %84 : vector<1x128xf32>
    %86 = arith.mulf %80, %80 : vector<1x128xf32>
    %87 = arith.subf %85, %86 : vector<1x128xf32>
    %cst_46 = arith.constant 0.000000e+00 : f32
    %88 = vector.broadcast %cst_46 : f32 to vector<1x128xf32>
    %89 = arith.maximumf %87, %88 : vector<1x128xf32>
    %cst_47 = arith.constant 9.99999974E-6 : f32
    %90 = vector.broadcast %cst_47 : f32 to vector<1x128xf32>
    %91 = arith.addf %89, %90 : vector<1x128xf32>
    %92 = math.rsqrt %91 : vector<1x128xf32>
    %93 = arith.mulf %75, %92 : vector<1x128xf32>
    %94 = arith.mulf %80, %93 : vector<1x128xf32>
    %95 = arith.subf %76, %94 : vector<1x128xf32>
    %96 = vector.broadcast %93 : vector<1x128xf32> to vector<8x128xf32>
    %97 = arith.mulf %74, %96 : vector<8x128xf32>
    %98 = vector.broadcast %95 : vector<1x128xf32> to vector<8x128xf32>
    %99 = arith.addf %97, %98 : vector<8x128xf32>
    %100 = arith.mulf %99, %99 : vector<8x128xf32>
    %cst_48 = arith.constant dense<0.000000e+00> : vector<8xf32>
    %101 = vector.multi_reduction <add>, %100, %cst_48 [1] : vector<8x128xf32> to vector<8xf32>
    %102 = vector.shape_cast %101 : vector<8xf32> to vector<8x1xf32>
    %cst_49 = arith.constant 1.000000e-24 : f32
    %103 = vector.broadcast %cst_49 : f32 to vector<8x1xf32>
    %104 = arith.maximumf %102, %103 : vector<8x1xf32>
    %105 = math.rsqrt %104 : vector<8x1xf32>
    %106 = vector.broadcast %105 : vector<8x1xf32> to vector<8x128xf32>
    %107 = arith.mulf %99, %106 : vector<8x128xf32>
    %c0_50 = arith.constant 0 : index
    %c0_51 = arith.constant 0 : index
    %c0_52 = arith.constant 0 : index
    %108 = vector.load %arg16[%c0_50, %c0_51, %c0_52] : memref<1x8x128xf32, #tpu.memory_space<vmem>>, vector<1x8x128xf32>
    %109 = vector.shape_cast %108 : vector<1x8x128xf32> to vector<8x128xf32>
    %110 = vector.shape_cast %107 : vector<8x128xf32> to vector<1x8x128xf32>
    tpu.vector_store %arg16[%c0_50, %c0_51, %c0_52], %110 {strides = array<i32>} : memref<1x8x128xf32, #tpu.memory_space<vmem>>, vector<1x8x128xf32>,
    %cst_53 = arith.constant 0.000000e+00 : f32
    %111 = vector.broadcast %cst_53 : f32 to vector<8x512xf32>
    %112 = arith.maximumf %8, %111 : vector<8x512xf32>
    %113 = arith.truncf %112 : vector<8x512xf32> to vector<8x512xbf16>
    %c0_54 = arith.constant 0 : index
    %c0_55 = arith.constant 0 : index
    %114 = vector.load %arg14[%c0_54, %c0_55] : memref<512x128xbf16, #tpu.memory_space<vmem>>, vector<512x128xbf16>
    %cst_56 = arith.constant dense<0.000000e+00> : vector<8x128xf32>
    %115 = tpu.matmul %113, %114, %cst_56 {dimension_numbers = #tpu.dot_dimension_numbers<[1], [0], [0], [1], [0, 0, 1, 1], [], []>} : vector<8x512xbf16>, vector<512x128xbf16>, vector<8x128xf32> -> vector<8x128xf32>
    %c0_57 = arith.constant 0 : index
    %c0_58 = arith.constant 0 : index
    %116 = vector.load %arg15[%c0_57, %c0_58] : memref<1x128xf32, #tpu.memory_space<vmem>>, vector<1x128xf32>
    %117 = vector.broadcast %116 : vector<1x128xf32> to vector<8x128xf32>
    %118 = arith.addf %115, %117 : vector<8x128xf32>
    %119 = tpu.iota {dimensions = array<i32: 1>} : vector<8x128xi32>
    %c10_i32 = arith.constant 10 : i32
    %120 = vector.broadcast %c10_i32 : i32 to vector<8x128xi32>
    %121 = arith.cmpi slt, %119, %120 : vector<8x128xi32>
    %cst_59 = arith.constant -1.000000e+30 : f32
    %122 = vector.broadcast %cst_59 : f32 to vector<8x128xf32>
    %123 = arith.select %121, %118, %122 : vector<8x128xi1>, vector<8x128xf32>
    %cst_60 = arith.constant dense<0xFF800000> : vector<8xf32>
    %124 = vector.multi_reduction <maximumf>, %123, %cst_60 [1] : vector<8x128xf32> to vector<8xf32>
    %125 = vector.shape_cast %124 : vector<8xf32> to vector<8x1xf32>
    %126 = vector.broadcast %125 : vector<8x1xf32> to vector<8x128xf32>
    %127 = arith.subf %123, %126 : vector<8x128xf32>
    %128 = math.exp %127 : vector<8x128xf32>
    %cst_61 = arith.constant dense<0.000000e+00> : vector<8xf32>
    %129 = vector.multi_reduction <add>, %128, %cst_61 [1] : vector<8x128xf32> to vector<8xf32>
    %130 = vector.shape_cast %129 : vector<8xf32> to vector<8x1xf32>
    %131 = tpu.reciprocal %130 {approx = true} : vector<8x1xf32> -> vector<8x1xf32>
    %132 = vector.broadcast %131 : vector<8x1xf32> to vector<8x128xf32>
    %133 = arith.mulf %128, %132 : vector<8x128xf32>
    %c0_62 = arith.constant 0 : index
    %c0_63 = arith.constant 0 : index
    %c0_64 = arith.constant 0 : index
    %134 = vector.load %arg17[%c0_62, %c0_63, %c0_64] : memref<1x8x128xf32, #tpu.memory_space<vmem>>, vector<1x8x128xf32>
    %135 = vector.shape_cast %134 : vector<1x8x128xf32> to vector<8x128xf32>
    %136 = vector.shape_cast %133 : vector<8x128xf32> to vector<1x8x128xf32>
    tpu.vector_store %arg17[%c0_62, %c0_63, %c0_64], %136 {strides = array<i32>} : memref<1x8x128xf32, #tpu.memory_space<vmem>>, vector<1x8x128xf32>,
    return
  }
  func.func @transform_0(%arg0: i32) -> (i32, i32, i32) {
    %c0_i32 = arith.constant 0 : i32
    %c0_i32_0 = arith.constant 0 : i32
    %c0_i32_1 = arith.constant 0 : i32
    return %arg0, %c0_i32, %c0_i32_0 : i32, i32, i32
  }
  func.func @transform_1(%arg0: i32) -> (i32, i32) {
    %c0_i32 = arith.constant 0 : i32
    %c0_i32_0 = arith.constant 0 : i32
    %c0_i32_1 = arith.constant 0 : i32
    return %c0_i32, %c0_i32_0 : i32, i32
  }
  func.func @transform_2(%arg0: i32) -> (i32, i32) {
    %c0_i32 = arith.constant 0 : i32
    %c0_i32_0 = arith.constant 0 : i32
    %c0_i32_1 = arith.constant 0 : i32
    return %c0_i32, %c0_i32_0 : i32, i32
  }
  func.func @transform_3(%arg0: i32) -> (i32, i32) {
    %c0_i32 = arith.constant 0 : i32
    %c0_i32_0 = arith.constant 0 : i32
    %c0_i32_1 = arith.constant 0 : i32
    return %c0_i32, %c0_i32_0 : i32, i32
  }
  func.func @transform_4(%arg0: i32) -> (i32, i32) {
    %c0_i32 = arith.constant 0 : i32
    %c0_i32_0 = arith.constant 0 : i32
    %c0_i32_1 = arith.constant 0 : i32
    return %c0_i32, %c0_i32_0 : i32, i32
  }
  func.func @transform_5(%arg0: i32) -> (i32, i32) {
    %c0_i32 = arith.constant 0 : i32
    %c0_i32_0 = arith.constant 0 : i32
    %c0_i32_1 = arith.constant 0 : i32
    return %c0_i32, %c0_i32_0 : i32, i32
  }
  func.func @transform_6(%arg0: i32) -> (i32, i32) {
    %c0_i32 = arith.constant 0 : i32
    %c0_i32_0 = arith.constant 0 : i32
    %c0_i32_1 = arith.constant 0 : i32
    return %c0_i32, %c0_i32_0 : i32, i32
  }
  func.func @transform_7(%arg0: i32) -> (i32, i32) {
    %c0_i32 = arith.constant 0 : i32
    %c0_i32_0 = arith.constant 0 : i32
    %c0_i32_1 = arith.constant 0 : i32
    return %c0_i32, %c0_i32_0 : i32, i32
  }
  func.func @transform_8(%arg0: i32) -> (i32, i32) {
    %c0_i32 = arith.constant 0 : i32
    %c0_i32_0 = arith.constant 0 : i32
    %c0_i32_1 = arith.constant 0 : i32
    return %c0_i32, %c0_i32_0 : i32, i32
  }
  func.func @transform_9(%arg0: i32) -> (i32, i32) {
    %c0_i32 = arith.constant 0 : i32
    %c0_i32_0 = arith.constant 0 : i32
    %c0_i32_1 = arith.constant 0 : i32
    return %c0_i32, %c0_i32_0 : i32, i32
  }
  func.func @transform_10(%arg0: i32) -> (i32, i32) {
    %c0_i32 = arith.constant 0 : i32
    %c0_i32_0 = arith.constant 0 : i32
    %c0_i32_1 = arith.constant 0 : i32
    return %c0_i32, %c0_i32_0 : i32, i32
  }
  func.func @transform_11(%arg0: i32) -> (i32, i32) {
    %c0_i32 = arith.constant 0 : i32
    %c0_i32_0 = arith.constant 0 : i32
    %c0_i32_1 = arith.constant 0 : i32
    return %c0_i32, %c0_i32_0 : i32, i32
  }
  func.func @transform_12(%arg0: i32) -> (i32, i32) {
    %c0_i32 = arith.constant 0 : i32
    %c0_i32_0 = arith.constant 0 : i32
    %c0_i32_1 = arith.constant 0 : i32
    return %c0_i32, %c0_i32_0 : i32, i32
  }
  func.func @transform_13(%arg0: i32) -> (i32, i32) {
    %c0_i32 = arith.constant 0 : i32
    %c0_i32_0 = arith.constant 0 : i32
    %c0_i32_1 = arith.constant 0 : i32
    return %c0_i32, %c0_i32_0 : i32, i32
  }
  func.func @transform_14(%arg0: i32) -> (i32, i32) {
    %c0_i32 = arith.constant 0 : i32
    %c0_i32_0 = arith.constant 0 : i32
    %c0_i32_1 = arith.constant 0 : i32
    return %c0_i32, %c0_i32_0 : i32, i32
  }
  func.func @transform_15(%arg0: i32) -> (i32, i32, i32) {
    %c0_i32 = arith.constant 0 : i32
    %c0_i32_0 = arith.constant 0 : i32
    %c0_i32_1 = arith.constant 0 : i32
    return %arg0, %c0_i32, %c0_i32_0 : i32, i32, i32
  }
  func.func @transform_16(%arg0: i32) -> (i32, i32, i32) {
    %c0_i32 = arith.constant 0 : i32
    %c0_i32_0 = arith.constant 0 : i32
    %c0_i32_1 = arith.constant 0 : i32
    return %arg0, %c0_i32, %c0_i32_0 : i32, i32, i32
  }
}

</mosaic_0001>

<bundles_post_ra>
// kernel: network_forward.1
= control target key start
LH: loop header
LB: loop body
LE: loop exit
PB: predicated region body
PF: predicated region fallthrough
CT: control target
= control target key end

     0   :  { %s6288_s0 = inlined_call_operand.vmem [shape: bf16[2,8,512], index: 0, kind: input, shape index: {}]   ;;  %s6289_s1 = inlined_call_operand.hbm [shape: bf16[512,1024], index: 1, kind: input, shape index: {}]   ;;  %s6290_s2 = inlined_call_operand.vmem [shape: f32[1,1024], index: 2, kind: input, shape index: {}]   ;;  %s6291_s3 = inlined_call_operand.vmem [shape: f32[1,512], index: 3, kind: input, shape index: {}]   ;;  %s6292_s4 = inlined_call_operand.vmem [shape: f32[1,512], index: 4, kind: input, shape index: {}]   ;;  %s6293_s5 = inlined_call_operand.hbm [shape: bf16[512,512], index: 5, kind: input, shape index: {}]   ;;  %s6294_s6 = inlined_call_operand.vmem [shape: f32[1,512], index: 6, kind: input, shape index: {}]   ;;  %s6295_s7 = inlined_call_operand.vmem [shape: f32[1,512], index: 7, kind: input, shape index: {}]   ;;  %s6296_s8 = inlined_call_operand.vmem [shape: f32[1,512], index: 8, kind: input, shape index: {}]   ;;  %s6297_s9 = inlined_call_operand.vmem [shape: bf16[512,128], index: 9, kind: input, shape index: {}]   ;;  %s6298_s10 = inlined_call_operand.vmem [shape: f32[1,128], index: 10, kind: input, shape index: {}]   ;;  %s6299_s11 = inlined_call_operand.vmem [shape: f32[1,128], index: 11, kind: input, shape index: {}]   ;;  %s6300_s12 = inlined_call_operand.vmem [shape: f32[1,128], index: 12, kind: input, shape index: {}]   ;;  %s6301_s13 = inlined_call_operand.vmem [shape: bf16[512,128], index: 13, kind: input, shape index: {}]   ;;  %s6302_s14 = inlined_call_operand.vmem [shape: f32[1,128], index: 14, kind: input, shape index: {}]   ;;  %s6303_s15 = inlined_call_operand.vmem [shape: f32[2,8,128], index: 15, kind: output, shape index: {0}]   ;;  %s6304_s16 = inlined_call_operand.vmem [shape: f32[2,8,128], index: 16, kind: output, shape index: {1}]  }
   0x1   :  { %6308 = sst [smem:[#allocation9_spill]] %s6288_s0 }
   0x2   :  { %6309 = sst [smem:[#allocation10_spill]] %s6304_s16 }
   0x3   :  { %22 = vsyncpa [#allocation3], 0 }
   0x4   :  { %23 = vsyncpa [#allocation5], 0  ;;  %s5783_s21 = smov 0  }
   0x5 LB: > { %6310 = sst [smem:[#allocation8_spill]] %s5689_s21  ;;  %s5691_s22 = smov [#allocation2]   ;;  %s5689_s21 = sphi %s5783_s21, %s29_s21  }
   0x6   : > { %s418_s23 = sshll.u32 %s5691_s22, 4  ;;  %s5789_s24 = sadd.s32 4294967295, %s5689_s21   ;;  %s419_s23 = int_to_ptr.vmem [resolvable:$true] %s418_s23 }
   0x7   : > { %p4708_p0 = scmp.ge.s32.totalorder %s5689_s21, 1  ;;  %p406_p1 = scmp.lt.s32.totalorder %s5689_s21, 3 }
   0x8   : > { %p6305_p3 = scmp.eq.s32.totalorder %s5789_s24, 0  ;;  %s5692_s26 = smov [#allocation4]  }
   0x9   : > { %p5793_p2 = pnand %p4708_p0, %p406_p1  ;;  %s440_s27 = sshll.u32 %s5692_s26, 4  ;;  %s5806_s27 = int_to_ptr.vmem [resolvable:$true] %s440_s27 }
   0xa   : > { %s5619_s0 = scalar_lea.hbm %s6289_s1, 32768 }
   0xb   : > { %s6311_s25 = scalar_select %p5793_p2, 1, 0 }
   0xc   : > { %p5308_p4 = pneg %p5793_p2  ;;  %p5620_p6 = scmp.ne.s32.totalorder %s6289_s1, %s5619_s0 }
   0xd   : > { %p5626_p10 = scmp.lt.u32.totalorder %s5619_s0, %s6289_s1 }
   0xe   : > { %p5802_p5 = pnand %p6305_p3, %p5308_p4 }
  0x10   : > { %p5621_p7 = pneg %p5802_p5 }
  0x12   : > { %p5622_p8 = pnand %p5621_p7, %p5620_p6 }
  0x14   : > { %p5623_p9 = pneg %p5622_p8 }
  0x16   : > { %p5628_p11 = pnand %p5626_p10, %p5623_p9 }
  0x18   : > { %5631 = shalt.err (!%p5628_p11)
}
  0x19   : > { %s5632_s22 = scalar_lea.vmem %s419_s23, 32768  ;;  %p5640_p1 = scmp.lt.s32.totalorder %s419_s23, %s419_s23 }
  0x1a   : > { %p5633_p12 = scmp.ne.s32.totalorder %s419_s23, %s5632_s22  ;;  %p5641_p4 = scmp.lt.s32.totalorder %s5632_s22, %s5632_s22 }
  0x1c   : > { %p5635_p13 = pnand %p5633_p12, %p5621_p7  ;;  %p5642_p3 = por %p5641_p4, %p5640_p1 }
  0x1e   : > { %p5636_p0 = pneg %p5635_p13 }
  0x20   : > { %p5643_p2 = pnand %p5642_p3, %p5636_p0 }
  0x22   : > { %5646 = shalt.err (!%p5643_p2)
}
  0x23   : > { %s5693_s26 = smov 512   ;;  %s5694_s29 = smov 32  }
  0x24   : > { %5311 = dma.hbm_to_vmem [thread:$0]  (!%p5802_p5), %s6289_s1, 32768, %s419_s23, [#allocation3], %s5693_s26, %s5693_s26, %s5694_s29  }
  0x25   : > { %s5647_s19 = scalar_lea.hbm %s6293_s5, 16384 }
  0x26   : > { %p5648_p6 = scmp.ne.s32.totalorder %s6293_s5, %s5647_s19  ;;  %p5654_p8 = scmp.lt.u32.totalorder %s5647_s19, %s6293_s5 }
  0x28   : > { %p5650_p2 = pnand %p5648_p6, %p5621_p7 }
  0x2a   : > { %p5651_p3 = pneg %p5650_p2 }
  0x2c   : > { %p5656_p9 = pnand %p5654_p8, %p5651_p3 }
  0x2e   : > { %5659 = shalt.err (!%p5656_p9)
}
  0x2f   : > { %s5660_s23 = scalar_lea.vmem %s5806_s27, 16384  ;;  %p5668_p13 = scmp.lt.s32.totalorder %s5806_s27, %s5806_s27 }
  0x30   : > { %p5661_p10 = scmp.ne.s32.totalorder %s5806_s27, %s5660_s23  ;;  %p5669_p0 = scmp.lt.s32.totalorder %s5660_s23, %s5660_s23 }
  0x32   : > { %p5663_p11 = pnand %p5661_p10, %p5621_p7  ;;  %p5670_p1 = por %p5669_p0, %p5668_p13 }
  0x34   : > { %p5664_p12 = pneg %p5663_p11 }
  0x36   : > { %p5671_p4 = pnand %p5670_p1, %p5664_p12 }
  0x38   : > { %5674 = shalt.err (!%p5671_p4)
}
  0x39   : > { %s5695_s16 = smov 256   ;;  %s5696_s21 = smov 16  }
  0x3a   : > { %5314 = dma.hbm_to_vmem [thread:$0]  (!%p5802_p5), %s6293_s5, 16384, %s5806_s27, [#allocation5], %s5695_s16, %s5695_s16, %s5696_s21  }
  0x3b   : > { %p6313_p6 = scmp.ne.s32.totalorder %s6311_s25, 0 }
  0x3c   : > { %p6314_p7 = scmp.eq.s32.totalorder (!%p6313_p6), %s5789_s24, 0 }
  0x3d   : > { %491 = sbr.rel (%p6313_p6) target bundleno = 1400 (0x578), region = 80 }
  0x44   : > { %5680 = dma.done.wait (%p6314_p7), [#allocation3], 32768   ;;  %p6315_p2 = pmov %p6314_p7 }
  0x46   : > { %5682 = vsyncadd (%p6315_p2), [#allocation3], 4294934528  ;;  %p6316_p3 = pmov %p6315_p2 }
  0x47   : > { %p6317_p8 = pmov %p6315_p2 }
  0x48   : > { %5684 = dma.done.wait (%p6316_p3), [#allocation5], 16384  }
  0x49   : > { %5686 = vsyncadd (%p6317_p8), [#allocation5], 4294950912  ;;  %v564_v0 = vld [vmem:[#allocation2] sm:$0xff]  ;;  %v565_v2 = vld [vmem:[#allocation2 + $0x8] sm:$0xff]  ;;  %p548_p5 = scmp.lt.s32.totalorder %s5789_s24, 1  ;;  %s6318_s30 = sld [smem:[#allocation9_spill]] }
  0x4a   : > { %v568_v1 = vld [vmem:[#allocation2 + $0x20] sm:$0xff]  ;;  %v569_v4 = vld [vmem:[#allocation2 + $0x28] sm:$0xff]  ;;  %s6319_s16 = sld [smem:[#allocation10_spill]] }
  0x4b   : > { %v4724_v3 = vcombine.high %v564_v0, %v568_v1  ;;  %v4723_v5 = vcombine.low %v564_v0, %v568_v1  ;;  %v572_v6 = vld [vmem:[#allocation2 + $0x40] sm:$0xff]  ;;  %v4726_v8 = vcombine.high %v565_v2, %v569_v4  ;;  %v4725_v9 = vcombine.low %v565_v2, %v569_v4  ;;  %v573_v11 = vld [vmem:[#allocation2 + $0x48] sm:$0xff]  ;;  %s6322_s24 = smov (!%p548_p5, %s5789_s24), 1 }
  0x4c   : > { %v576_v7 = vld [vmem:[#allocation2 + $0x60] sm:$0xff]  ;;  %v577_v12 = vld [vmem:[#allocation2 + $0x68] sm:$0xff]  ;;  %s5175_s25 = sshll.u32 %s6322_s24, 4  ;;  %s4717_s17 = sshll.u32 %s6322_s24, 3 }
  0x4d   : > { %v4732_v10 = vcombine.high %v572_v6, %v576_v7  ;;  %v580_v13 = vld [vmem:[#allocation2 + $0x80] sm:$0xff]  ;;  %2156 = vmatprep.subr.bf16.mxu0 %v4724_v3  ;;  %v4734_v14 = vcombine.high %v573_v11, %v577_v12  ;;  %v581_v16 = vld [vmem:[#allocation2 + $0x88] sm:$0xff]  ;;  %2238 = vmatprep.subr.bf16.mxu1 %v4726_v8  ;;  %v4731_v18 = vcombine.low %v572_v6, %v576_v7  ;;  %s556_s20 = scalar_lea.vmem %s6303_s15, %s4717_s17 }
  0x4e   : > { %v584_v15 = vld [vmem:[#allocation2 + $0xa0] sm:$0xff]  ;;  %v585_v17 = vld [vmem:[#allocation2 + $0xa8] sm:$0xff]  ;;  %2157 = vmatpush1.bf16.msra.mxu0 %v4723_v5  ;;  %2239 = vmatpush1.bf16.msra.mxu1 %v4725_v9  ;;  %v4733_v19 = vcombine.low %v573_v11, %v577_v12 }
  0x4f   : > { %2158 = vmatprep.subr.bf16.mxu0 %v4732_v10  ;;  %v4740_v20 = vcombine.high %v580_v13, %v584_v15  ;;  %2240 = vmatprep.subr.bf16.mxu1 %v4734_v14  ;;  %v4742_v21 = vcombine.high %v581_v16, %v585_v17  ;;  %v588_v22 = vld [vmem:[#allocation2 + $0xc0] sm:$0xff]  ;;  %v589_v24 = vld [vmem:[#allocation2 + $0xc8] sm:$0xff]  ;;  %v4739_v26 = vcombine.low %v580_v13, %v584_v15  ;;  %s5873_s0 = scalar_lea.vmem %s6318_s30, %s5175_s25 }
  0x50   : > { %v592_v23 = vld [vmem:[#allocation2 + $0xe0] sm:$0xff]  ;;  %v593_v25 = vld [vmem:[#allocation2 + $0xe8] sm:$0xff]  ;;  %v4741_v27 = vcombine.low %v581_v16, %v585_v17  ;;  %s560_s21 = scalar_lea.vmem %s6319_s16, %s4717_s17 }
  0x51   : > { %v4748_v28 = vcombine.high %v588_v22, %v592_v23  ;;  %v4750_v29 = vcombine.high %v589_v24, %v593_v25  ;;  %v596_v30 = vld [vmem:[#allocation2 + $0x100] sm:$0xff]  ;;  %v597_v32 = vld [vmem:[#allocation2 + $0x108] sm:$0xff]  ;;  %v4747_v34 = vcombine.low %v588_v22, %v592_v23  ;;  %v4749_v35 = vcombine.low %v589_v24, %v593_v25 }
  0x52   : > { %2159 = vmatpush1.bf16.msra.mxu0 %v4731_v18  ;;  %2241 = vmatpush1.bf16.msra.mxu1 %v4733_v19  ;;  %v600_v31 = vld [vmem:[#allocation2 + $0x120] sm:$0xff]  ;;  %v601_v33 = vld [vmem:[#allocation2 + $0x128] sm:$0xff] }
  0x53   : > { %2160 = vmatprep.subr.bf16.mxu0 %v4740_v20  ;;  %2242 = vmatprep.subr.bf16.mxu1 %v4742_v21  ;;  %v4756_v36 = vcombine.high %v596_v30, %v600_v31  ;;  %v4758_v37 = vcombine.high %v597_v32, %v601_v33  ;;  %v604_v38 = vld [vmem:[#allocation2 + $0x140] sm:$0xff]  ;;  %v605_v40 = vld [vmem:[#allocation2 + $0x148] sm:$0xff]  ;;  %v4755_v42 = vcombine.low %v596_v30, %v600_v31 }
  0x54   : > { %v608_v39 = vld [vmem:[#allocation2 + $0x160] sm:$0xff]  ;;  %v609_v41 = vld [vmem:[#allocation2 + $0x168] sm:$0xff]  ;;  %v4757_v43 = vcombine.low %v597_v32, %v601_v33 }
  0x55   : > { %v4764_v44 = vcombine.high %v604_v38, %v608_v39  ;;  %v4766_v45 = vcombine.high %v605_v40, %v609_v41  ;;  %v612_v46 = vld [vmem:[#allocation2 + $0x180] sm:$0xff]  ;;  %v613_v48 = vld [vmem:[#allocation2 + $0x188] sm:$0xff]  ;;  %v4763_v50 = vcombine.low %v604_v38, %v608_v39  ;;  %v4765_v51 = vcombine.low %v605_v40, %v609_v41 }
  0x56   : > { %2161 = vmatpush1.bf16.msra.mxu0 %v4739_v26  ;;  %2243 = vmatpush1.bf16.msra.mxu1 %v4741_v27  ;;  %v616_v47 = vld [vmem:[#allocation2 + $0x1a0] sm:$0xff]  ;;  %v617_v49 = vld [vmem:[#allocation2 + $0x1a8] sm:$0xff] }
  0x57   : > { %2162 = vmatprep.subr.bf16.mxu0 %v4748_v28  ;;  %2244 = vmatprep.subr.bf16.mxu1 %v4750_v29  ;;  %v4772_v52 = vcombine.high %v612_v46, %v616_v47  ;;  %v5876_v53 = vld [vmem:[%s5873_s0] sm:$0xff]  ;;  %v4774_v54 = vcombine.high %v613_v48, %v617_v49  ;;  %v621_v58 = vld [vmem:[#allocation2 + $0x1c8] sm:$0xff]  ;;  %v4771_v60 = vcombine.low %v612_v46, %v616_v47 }
  0x58   : > { %v620_v55 = vld [vmem:[#allocation2 + $0x1c0] sm:$0xff]  ;;  %v5880_v57 = vcombine.high %v5876_v53, %v5876_v53  ;;  %v625_v59 = vld [vmem:[#allocation2 + $0x1e8] sm:$0xff]  ;;  %v4773_v61 = vcombine.low %v613_v48, %v617_v49 }
  0x59   : > { %v624_v56 = vld [vmem:[#allocation2 + $0x1e0] sm:$0xff]  ;;  %v4782_v63 = vcombine.high %v621_v58, %v625_v59  ;;  %v629_v2 = vld [vmem:[#allocation2 + $0x208] sm:$0xff]  ;;  %v4781_v5 = vcombine.low %v621_v58, %v625_v59 }
  0x5a   : > { %2163 = vmatpush1.bf16.msra.mxu0 %v4747_v34  ;;  %2245 = vmatpush1.bf16.msra.mxu1 %v4749_v35  ;;  %v4780_v62 = vcombine.high %v620_v55, %v624_v56  ;;  %v628_v0 = vld [vmem:[#allocation2 + $0x200] sm:$0xff]  ;;  %v633_v3 = vld [vmem:[#allocation2 + $0x228] sm:$0xff]  ;;  %v4779_v4 = vcombine.low %v620_v55, %v624_v56 }
  0x5b   : > { %2164 = vmatprep.subr.bf16.mxu0 %v4756_v36  ;;  %2246 = vmatprep.subr.bf16.mxu1 %v4758_v37  ;;  %v632_v1 = vld [vmem:[#allocation2 + $0x220] sm:$0xff]  ;;  %v4790_v7 = vcombine.high %v629_v2, %v633_v3  ;;  %v637_v10 = vld [vmem:[#allocation2 + $0x248] sm:$0xff]  ;;  %v4789_v13 = vcombine.low %v629_v2, %v633_v3 }
  0x5c   : > { %2188 = vmatprep.mubr.bf16.mxu0 %v5880_v57  ;;  %2270 = vmatprep.mubr.bf16.mxu1 %v5880_v57  ;;  %v4788_v6 = vcombine.high %v628_v0, %v632_v1  ;;  %v636_v8 = vld [vmem:[#allocation2 + $0x240] sm:$0xff]  ;;  %v641_v11 = vld [vmem:[#allocation2 + $0x268] sm:$0xff]  ;;  %v4787_v12 = vcombine.low %v628_v0, %v632_v1 }
  0x5d   : > { %v640_v9 = vld [vmem:[#allocation2 + $0x260] sm:$0xff]  ;;  %v4798_v15 = vcombine.high %v637_v10, %v641_v11  ;;  %v645_v18 = vld [vmem:[#allocation2 + $0x288] sm:$0xff]  ;;  %v4797_v21 = vcombine.low %v637_v10, %v641_v11 }
  0x5e   : > { %2165 = vmatpush1.bf16.msra.mxu0 %v4755_v42  ;;  %2247 = vmatpush1.bf16.msra.mxu1 %v4757_v43  ;;  %v4796_v14 = vcombine.high %v636_v8, %v640_v9  ;;  %v644_v16 = vld [vmem:[#allocation2 + $0x280] sm:$0xff]  ;;  %v649_v19 = vld [vmem:[#allocation2 + $0x2a8] sm:$0xff]  ;;  %v4795_v20 = vcombine.low %v636_v8, %v640_v9 }
  0x5f   : > { %2166 = vmatprep.subr.bf16.mxu0 %v4764_v44  ;;  %2248 = vmatprep.subr.bf16.mxu1 %v4766_v45  ;;  %v648_v17 = vld [vmem:[#allocation2 + $0x2a0] sm:$0xff]  ;;  %v4806_v23 = vcombine.high %v645_v18, %v649_v19  ;;  %v653_v26 = vld [vmem:[#allocation2 + $0x2c8] sm:$0xff]  ;;  %v4805_v29 = vcombine.low %v645_v18, %v649_v19 }
  0x60   : > { %v4804_v22 = vcombine.high %v644_v16, %v648_v17  ;;  %v652_v24 = vld [vmem:[#allocation2 + $0x2c0] sm:$0xff]  ;;  %v657_v27 = vld [vmem:[#allocation2 + $0x2e8] sm:$0xff]  ;;  %v4803_v28 = vcombine.low %v644_v16, %v648_v17 }
  0x61   : > { %v656_v25 = vld [vmem:[#allocation2 + $0x2e0] sm:$0xff]  ;;  %v4814_v31 = vcombine.high %v653_v26, %v657_v27  ;;  %v661_v34 = vld [vmem:[#allocation2 + $0x308] sm:$0xff]  ;;  %v4813_v37 = vcombine.low %v653_v26, %v657_v27 }
  0x62   : > { %2167 = vmatpush1.bf16.msra.mxu0 %v4763_v50  ;;  %2249 = vmatpush1.bf16.msra.mxu1 %v4765_v51  ;;  %v4812_v30 = vcombine.high %v652_v24, %v656_v25  ;;  %v660_v32 = vld [vmem:[#allocation2 + $0x300] sm:$0xff]  ;;  %v665_v35 = vld [vmem:[#allocation2 + $0x328] sm:$0xff]  ;;  %v4811_v36 = vcombine.low %v652_v24, %v656_v25 }
  0x63   : > { %2168 = vmatprep.subr.bf16.mxu0 %v4772_v52  ;;  %2250 = vmatprep.subr.bf16.mxu1 %v4774_v54  ;;  %v664_v33 = vld [vmem:[#allocation2 + $0x320] sm:$0xff]  ;;  %v4822_v39 = vcombine.high %v661_v34, %v665_v35  ;;  %v669_v42 = vld [vmem:[#allocation2 + $0x348] sm:$0xff]  ;;  %v4821_v45 = vcombine.low %v661_v34, %v665_v35 }
  0x64   : > { %v4820_v38 = vcombine.high %v660_v32, %v664_v33  ;;  %v668_v40 = vld [vmem:[#allocation2 + $0x340] sm:$0xff]  ;;  %v673_v43 = vld [vmem:[#allocation2 + $0x368] sm:$0xff]  ;;  %v4819_v44 = vcombine.low %v660_v32, %v664_v33 }
  0x65   : > { %v672_v41 = vld [vmem:[#allocation2 + $0x360] sm:$0xff]  ;;  %v4830_v47 = vcombine.high %v669_v42, %v673_v43  ;;  %v677_v50 = vld [vmem:[#allocation2 + $0x388] sm:$0xff]  ;;  %v4829_v54 = vcombine.low %v669_v42, %v673_v43 }
  0x66   : > { %2169 = vmatpush1.bf16.msra.mxu0 %v4771_v60  ;;  %2251 = vmatpush1.bf16.msra.mxu1 %v4773_v61  ;;  %v4828_v46 = vcombine.high %v668_v40, %v672_v41  ;;  %v676_v48 = vld [vmem:[#allocation2 + $0x380] sm:$0xff]  ;;  %v681_v51 = vld [vmem:[#allocation2 + $0x3a8] sm:$0xff]  ;;  %v4827_v52 = vcombine.low %v668_v40, %v672_v41 }
  0x67   : > { %2170 = vmatprep.subr.bf16.mxu0 %v4780_v62  ;;  %2252 = vmatprep.subr.bf16.mxu1 %v4782_v63  ;;  %v680_v49 = vld [vmem:[#allocation2 + $0x3a0] sm:$0xff]  ;;  %v4838_v56 = vcombine.high %v677_v50, %v681_v51  ;;  %v685_v60 = vld [vmem:[#allocation2 + $0x3c8] sm:$0xff]  ;;  %v4837_v63 = vcombine.low %v677_v50, %v681_v51 }
  0x68   : > { %v4836_v55 = vcombine.high %v676_v48, %v680_v49  ;;  %v684_v58 = vld [vmem:[#allocation2 + $0x3c0] sm:$0xff]  ;;  %v689_v61 = vld [vmem:[#allocation2 + $0x3e8] sm:$0xff]  ;;  %v4835_v62 = vcombine.low %v676_v48, %v680_v49 }
  0x69   : > { %v688_v59 = vld [vmem:[#allocation2 + $0x3e0] sm:$0xff]  ;;  %v4846_v1 = vcombine.high %v685_v60, %v689_v61 }
  0x6a   : > { %2171 = vmatpush1.bf16.msra.mxu0 %v4779_v4  ;;  %2253 = vmatpush1.bf16.msra.mxu1 %v4781_v5  ;;  %v4844_v0 = vcombine.high %v684_v58, %v688_v59  ;;  %v692_v2 = vld [vmem:[#allocation2 + $0x400] sm:$0xff]  ;;  %v693_v4 = vld [vmem:[#allocation2 + $0x408] sm:$0xff] }
  0x6b   : > { %2172 = vmatprep.subr.bf16.mxu0 %v4788_v6  ;;  %2254 = vmatprep.subr.bf16.mxu1 %v4790_v7  ;;  %v696_v3 = vld [vmem:[#allocation2 + $0x420] sm:$0xff]  ;;  %v697_v5 = vld [vmem:[#allocation2 + $0x428] sm:$0xff]  ;;  %v4843_v6 = vcombine.low %v684_v58, %v688_v59  ;;  %v4845_v7 = vcombine.low %v685_v60, %v689_v61 }
  0x6c   : > { %v4852_v8 = vcombine.high %v692_v2, %v696_v3  ;;  %v4854_v9 = vcombine.high %v693_v4, %v697_v5  ;;  %v700_v10 = vld [vmem:[#allocation2 + $0x440] sm:$0xff]  ;;  %v4851_v16 = vcombine.low %v692_v2, %v696_v3  ;;  %v4853_v17 = vcombine.low %v693_v4, %v697_v5 }
  0x6d   : > { %v704_v11 = vld [vmem:[#allocation2 + $0x460] sm:$0xff] }
  0x6e   : > { %2173 = vmatpush1.bf16.msra.mxu0 %v4787_v12  ;;  %2255 = vmatpush1.bf16.msra.mxu1 %v4789_v13  ;;  %v5886_v12 = vcombine.low %v5876_v53, %v5876_v53  ;;  %v701_v13 = vld [vmem:[#allocation2 + $0x448] sm:$0xff]  ;;  %v4860_v18 = vcombine.high %v700_v10, %v704_v11  ;;  %v708_v19 = vld [vmem:[#allocation2 + $0x480] sm:$0xff]  ;;  %v4859_v24 = vcombine.low %v700_v10, %v704_v11 }
  0x6f   : > { %2174 = vmatprep.subr.bf16.mxu0 %v4796_v14  ;;  %2256 = vmatprep.subr.bf16.mxu1 %v4798_v15  ;;  %v705_v14 = vld [vmem:[#allocation2 + $0x468] sm:$0xff]  ;;  %v716_v27 = vld [vmem:[#allocation2 + $0x4c0] sm:$0xff] }
  0x70   : > { %v5889_v15 = vld [vmem:[%s5873_s0 + $0x8] sm:$0xff]  ;;  %v4861_v25 = vcombine.low %v701_v13, %v705_v14  ;;  %v724_v35 = vld [vmem:[#allocation2 + $0x500] sm:$0xff] }
  0x71   : > { %v5893_v53 = vcombine.high %v5889_v15, %v5889_v15  ;;  %v732_v43 = vld [vmem:[#allocation2 + $0x540] sm:$0xff] }
  0x72   : > { %2175 = vmatpush1.bf16.msra.mxu0 %v4795_v20  ;;  %2257 = vmatpush1.bf16.msra.mxu1 %v4797_v21  ;;  %v712_v20 = vld [vmem:[#allocation2 + $0x4a0] sm:$0xff]  ;;  %v709_v21 = vld [vmem:[#allocation2 + $0x488] sm:$0xff] }
  0x73   : > { %2176 = vmatprep.subr.bf16.mxu0 %v4804_v22  ;;  %2258 = vmatprep.subr.bf16.mxu1 %v4806_v23  ;;  %v4862_v22 = vcombine.high %v701_v13, %v705_v14  ;;  %v713_v23 = vld [vmem:[#allocation2 + $0x4a8] sm:$0xff]  ;;  %v4868_v26 = vcombine.high %v708_v19, %v712_v20  ;;  %v4867_v32 = vcombine.low %v708_v19, %v712_v20  ;;  %v740_v51 = vld [vmem:[#allocation2 + $0x580] sm:$0xff] }
  0x74   : > { %v4869_v33 = vcombine.low %v709_v21, %v713_v23  ;;  %v748_v61 = vld [vmem:[#allocation2 + $0x5c0] sm:$0xff]  ;;  %v769_v19 = vld [vmem:[#allocation2 + $0x668] sm:$0xff] }
  0x75   : > { %v756_v5 = vld [vmem:[#allocation2 + $0x600] sm:$0xff] }
  0x76   : > { %2177 = vmatpush1.bf16.msra.mxu0 %v4803_v28  ;;  %2259 = vmatpush1.bf16.msra.mxu1 %v4805_v29  ;;  %v720_v28 = vld [vmem:[#allocation2 + $0x4e0] sm:$0xff]  ;;  %v717_v29 = vld [vmem:[#allocation2 + $0x4c8] sm:$0xff] }
  0x77   : > { %2178 = vmatprep.subr.bf16.mxu0 %v4812_v30  ;;  %2260 = vmatprep.subr.bf16.mxu1 %v4814_v31  ;;  %v4870_v30 = vcombine.high %v709_v21, %v713_v23  ;;  %v721_v31 = vld [vmem:[#allocation2 + $0x4e8] sm:$0xff]  ;;  %v4876_v34 = vcombine.high %v716_v27, %v720_v28  ;;  %v4875_v40 = vcombine.low %v716_v27, %v720_v28  ;;  %v764_v14 = vld [vmem:[#allocation2 + $0x640] sm:$0xff] }
  0x78   : > { %v4877_v41 = vcombine.low %v717_v29, %v721_v31  ;;  %v772_v23 = vld [vmem:[#allocation2 + $0x680] sm:$0xff]  ;;  %v777_v27 = vld [vmem:[#allocation2 + $0x6a8] sm:$0xff] }
  0x7a   : > { %2179 = vmatpush1.bf16.msra.mxu0 %v4811_v36  ;;  %2261 = vmatpush1.bf16.msra.mxu1 %v4813_v37  ;;  %v728_v36 = vld [vmem:[#allocation2 + $0x520] sm:$0xff]  ;;  %v725_v37 = vld [vmem:[#allocation2 + $0x508] sm:$0xff] }
  0x7b   : > { %2180 = vmatprep.subr.bf16.mxu0 %v4820_v38  ;;  %2262 = vmatprep.subr.bf16.mxu1 %v4822_v39  ;;  %v4878_v38 = vcombine.high %v717_v29, %v721_v31  ;;  %v729_v39 = vld [vmem:[#allocation2 + $0x528] sm:$0xff]  ;;  %v4884_v42 = vcombine.high %v724_v35, %v728_v36  ;;  %v4883_v48 = vcombine.low %v724_v35, %v728_v36  ;;  %v780_v31 = vld [vmem:[#allocation2 + $0x6c0] sm:$0xff] }
  0x7c   : > { %v4885_v49 = vcombine.low %v725_v37, %v729_v39  ;;  %v785_v35 = vld [vmem:[#allocation2 + $0x6e8] sm:$0xff] }
  0x7e   : > { %2181 = vmatpush1.bf16.msra.mxu0 %v4819_v44  ;;  %2263 = vmatpush1.bf16.msra.mxu1 %v4821_v45  ;;  %v736_v44 = vld [vmem:[#allocation2 + $0x560] sm:$0xff]  ;;  %v733_v45 = vld [vmem:[#allocation2 + $0x548] sm:$0xff] }
  0x7f   : > { %2182 = vmatprep.subr.bf16.mxu0 %v4828_v46  ;;  %2264 = vmatprep.subr.bf16.mxu1 %v4830_v47  ;;  %v4886_v46 = vcombine.high %v725_v37, %v729_v39  ;;  %v737_v47 = vld [vmem:[#allocation2 + $0x568] sm:$0xff]  ;;  %v4892_v50 = vcombine.high %v732_v43, %v736_v44  ;;  %v4891_v58 = vcombine.low %v732_v43, %v736_v44  ;;  %v788_v39 = vld [vmem:[#allocation2 + $0x700] sm:$0xff] }
  0x80   : > { %v4893_v59 = vcombine.low %v733_v45, %v737_v47  ;;  %v793_v43 = vld [vmem:[#allocation2 + $0x728] sm:$0xff] }
  0x82   : > { %2183 = vmatpush1.bf16.msra.mxu0 %v4827_v52  ;;  %2265 = vmatpush1.bf16.msra.mxu1 %v4829_v54  ;;  %v744_v52 = vld [vmem:[#allocation2 + $0x5a0] sm:$0xff]  ;;  %v741_v54 = vld [vmem:[#allocation2 + $0x588] sm:$0xff] }
  0x83   : > { %2184 = vmatprep.subr.bf16.mxu0 %v4836_v55  ;;  %2266 = vmatprep.subr.bf16.mxu1 %v4838_v56  ;;  %v4894_v55 = vcombine.high %v733_v45, %v737_v47  ;;  %v745_v56 = vld [vmem:[#allocation2 + $0x5a8] sm:$0xff]  ;;  %v4900_v60 = vcombine.high %v740_v51, %v744_v52  ;;  %v4899_v2 = vcombine.low %v740_v51, %v744_v52  ;;  %v796_v47 = vld [vmem:[#allocation2 + $0x740] sm:$0xff] }
  0x84   : > { %v4901_v3 = vcombine.low %v741_v54, %v745_v56  ;;  %v801_v51 = vld [vmem:[#allocation2 + $0x768] sm:$0xff] }
  0x86   : > { %2185 = vmatpush1.bf16.msra.mxu0 %v4835_v62  ;;  %2267 = vmatpush1.bf16.msra.mxu1 %v4837_v63  ;;  %v752_v62 = vld [vmem:[#allocation2 + $0x5e0] sm:$0xff]  ;;  %v749_v63 = vld [vmem:[#allocation2 + $0x5c8] sm:$0xff] }
  0x87   : > { %2186 = vmatprep.subr.bf16.mxu0 %v4844_v0  ;;  %2268 = vmatprep.subr.bf16.mxu1 %v4846_v1  ;;  %v4902_v0 = vcombine.high %v741_v54, %v745_v56  ;;  %v753_v1 = vld [vmem:[#allocation2 + $0x5e8] sm:$0xff]  ;;  %v4908_v4 = vcombine.high %v748_v61, %v752_v62  ;;  %v4907_v10 = vcombine.low %v748_v61, %v752_v62  ;;  %v804_v56 = vld [vmem:[#allocation2 + $0x780] sm:$0xff] }
  0x88   : > { %v4909_v11 = vcombine.low %v749_v63, %v753_v1  ;;  %v809_v61 = vld [vmem:[#allocation2 + $0x7a8] sm:$0xff] }
  0x8a   : > { %2187 = vmatpush1.bf16.msra.mxu0 %v4843_v6  ;;  %2269 = vmatpush1.bf16.msra.mxu1 %v4845_v7  ;;  %v760_v6 = vld [vmem:[#allocation2 + $0x620] sm:$0xff]  ;;  %v757_v7 = vld [vmem:[#allocation2 + $0x608] sm:$0xff] }
  0x8b   : > { %2197 = vmatprep.subr.bf16.mxu0 %v4852_v8  ;;  %2279 = vmatprep.subr.bf16.mxu1 %v4854_v9  ;;  %v4910_v8 = vcombine.high %v749_v63, %v753_v1  ;;  %v761_v9 = vld [vmem:[#allocation2 + $0x628] sm:$0xff]  ;;  %v4916_v13 = vcombine.high %v756_v5, %v760_v6  ;;  %v4915_v20 = vcombine.low %v756_v5, %v760_v6  ;;  %v812_v1 = vld [vmem:[#allocation2 + $0x7c0] sm:$0xff] }
  0x8c   : > { %v4917_v21 = vcombine.low %v757_v7, %v761_v9  ;;  %v817_v5 = vld [vmem:[#allocation2 + $0x7e8] sm:$0xff] }
  0x8d   : > { %2189 = vmatmul.mubr.bf16.vlgmr.msra.gmra.mrb[0].mxu0 %v5886_v12  ;;  %2271 = vmatmul.mubr.bf16.vlgmr.msra.gmra.mrb[0].mxu1 %v5886_v12 }
  0x8e   : > { %2198 = vmatpush1.bf16.msra.mxu0 %v4851_v16  ;;  %2280 = vmatpush1.bf16.msra.mxu1 %v4853_v17  ;;  %v768_v16 = vld [vmem:[#allocation2 + $0x660] sm:$0xff]  ;;  %v765_v17 = vld [vmem:[#allocation2 + $0x648] sm:$0xff] }
  0x8f   : > { %2199 = vmatprep.subr.bf16.mxu0 %v4860_v18  ;;  %2281 = vmatprep.subr.bf16.mxu1 %v4862_v22  ;;  %v4918_v18 = vcombine.high %v757_v7, %v761_v9  ;;  %v4924_v22 = vcombine.high %v764_v14, %v768_v16  ;;  %v4923_v28 = vcombine.low %v764_v14, %v768_v16  ;;  %v566_v9 = vld [vmem:[#allocation2 + $0x10] sm:$0xff]  ;;  %v571_v14 = vld [vmem:[#allocation2 + $0x38] sm:$0xff] }
  0x90   : > { %2229 = vmatprep.mubr.bf16.mxu0 %v5893_v53  ;;  %2311 = vmatprep.mubr.bf16.mxu1 %v5893_v53  ;;  %v4925_v29 = vcombine.low %v765_v17, %v769_v19 }
  0x92   : > { %2200 = vmatpush1.bf16.msra.mxu0 %v4859_v24  ;;  %2282 = vmatpush1.bf16.msra.mxu1 %v4861_v25  ;;  %v776_v24 = vld [vmem:[#allocation2 + $0x6a0] sm:$0xff]  ;;  %v773_v25 = vld [vmem:[#allocation2 + $0x688] sm:$0xff] }
  0x93   : > { %2201 = vmatprep.subr.bf16.mxu0 %v4868_v26  ;;  %2283 = vmatprep.subr.bf16.mxu1 %v4870_v30  ;;  %v4926_v26 = vcombine.high %v765_v17, %v769_v19  ;;  %v4932_v30 = vcombine.high %v772_v23, %v776_v24  ;;  %v4931_v36 = vcombine.low %v772_v23, %v776_v24  ;;  %v574_v19 = vld [vmem:[#allocation2 + $0x50] sm:$0xff]  ;;  %v579_v23 = vld [vmem:[#allocation2 + $0x78] sm:$0xff] }
  0x94   : > { %v4933_v37 = vcombine.low %v773_v25, %v777_v27  ;;  %v5901_v24 = vcombine.low %v5889_v15, %v5889_v15  ;;  %v590_v15 = vld [vmem:[#allocation2 + $0xd0] sm:$0xff] }
  0x96   : > { %2202 = vmatpush1.bf16.msra.mxu0 %v4867_v32  ;;  %2284 = vmatpush1.bf16.msra.mxu1 %v4869_v33  ;;  %v784_v32 = vld [vmem:[#allocation2 + $0x6e0] sm:$0xff]  ;;  %v781_v33 = vld [vmem:[#allocation2 + $0x6c8] sm:$0xff] }
  0x97   : > { %2203 = vmatprep.subr.bf16.mxu0 %v4876_v34  ;;  %2285 = vmatprep.subr.bf16.mxu1 %v4878_v38  ;;  %v4934_v34 = vcombine.high %v773_v25, %v777_v27  ;;  %v4940_v38 = vcombine.high %v780_v31, %v784_v32  ;;  %v4939_v44 = vcombine.low %v780_v31, %v784_v32  ;;  %v586_v27 = vld [vmem:[#allocation2 + $0xb0] sm:$0xff]  ;;  %v587_v31 = vld [vmem:[#allocation2 + $0xb8] sm:$0xff] }
  0x98   : > { %v4941_v45 = vcombine.low %v781_v33, %v785_v35 }
  0x9a   : > { %2204 = vmatpush1.bf16.msra.mxu0 %v4875_v40  ;;  %2286 = vmatpush1.bf16.msra.mxu1 %v4877_v41  ;;  %v792_v40 = vld [vmem:[#allocation2 + $0x720] sm:$0xff]  ;;  %v789_v41 = vld [vmem:[#allocation2 + $0x708] sm:$0xff] }
  0x9b   : > { %2205 = vmatprep.subr.bf16.mxu0 %v4884_v42  ;;  %2287 = vmatprep.subr.bf16.mxu1 %v4886_v46  ;;  %v4942_v42 = vcombine.high %v781_v33, %v785_v35  ;;  %v4948_v46 = vcombine.high %v788_v39, %v792_v40  ;;  %v4947_v52 = vcombine.low %v788_v39, %v792_v40  ;;  %v595_v39 = vld [vmem:[#allocation2 + $0xf8] sm:$0xff] }
  0x9c   : > { %v4949_v54 = vcombine.low %v789_v41, %v793_v43 }
  0x9e   : > { %2206 = vmatpush1.bf16.msra.mxu0 %v4883_v48  ;;  %2288 = vmatpush1.bf16.msra.mxu1 %v4885_v49  ;;  %v800_v48 = vld [vmem:[#allocation2 + $0x760] sm:$0xff]  ;;  %v797_v49 = vld [vmem:[#allocation2 + $0x748] sm:$0xff] }
  0x9f   : > { %2207 = vmatprep.subr.bf16.mxu0 %v4892_v50  ;;  %2289 = vmatprep.subr.bf16.mxu1 %v4894_v55  ;;  %v4950_v50 = vcombine.high %v789_v41, %v793_v43  ;;  %v4956_v55 = vcombine.high %v796_v47, %v800_v48  ;;  %v4955_v62 = vcombine.low %v796_v47, %v800_v48  ;;  %v598_v41 = vld [vmem:[#allocation2 + $0x110] sm:$0xff] }
  0xa0   : > { %v4957_v63 = vcombine.low %v797_v49, %v801_v51 }
  0xa2   : > { %2208 = vmatpush1.bf16.msra.mxu0 %v4891_v58  ;;  %2290 = vmatpush1.bf16.msra.mxu1 %v4893_v59  ;;  %v808_v58 = vld [vmem:[#allocation2 + $0x7a0] sm:$0xff]  ;;  %v805_v59 = vld [vmem:[#allocation2 + $0x788] sm:$0xff] }
  0xa3   : > { %2209 = vmatprep.subr.bf16.mxu0 %v4900_v60  ;;  %2291 = vmatprep.subr.bf16.mxu1 %v4902_v0  ;;  %v4958_v60 = vcombine.high %v797_v49, %v801_v51  ;;  %v4964_v0 = vcombine.high %v804_v56, %v808_v58  ;;  %v4963_v6 = vcombine.low %v804_v56, %v808_v58  ;;  %v606_v49 = vld [vmem:[#allocation2 + $0x150] sm:$0xff] }
  0xa4   : > { %v4965_v7 = vcombine.low %v805_v59, %v809_v61  ;;  %v614_v58 = vld [vmem:[#allocation2 + $0x190] sm:$0xff] }
  0xa6   : > { %2210 = vmatpush1.bf16.msra.mxu0 %v4899_v2  ;;  %2292 = vmatpush1.bf16.msra.mxu1 %v4901_v3  ;;  %v816_v2 = vld [vmem:[#allocation2 + $0x7e0] sm:$0xff]  ;;  %v813_v3 = vld [vmem:[#allocation2 + $0x7c8] sm:$0xff] }
  0xa7   : > { %2211 = vmatprep.subr.bf16.mxu0 %v4908_v4  ;;  %2293 = vmatprep.subr.bf16.mxu1 %v4910_v8  ;;  %v4966_v4 = vcombine.high %v805_v59, %v809_v61  ;;  %v4972_v8 = vcombine.high %v812_v1, %v816_v2  ;;  %v4971_v16 = vcombine.low %v812_v1, %v816_v2  ;;  %v618_v59 = vld [vmem:[#allocation2 + $0x1b0] sm:$0xff] }
  0xa8   : > { %v4973_v17 = vcombine.low %v813_v3, %v817_v5  ;;  %v622_v2 = vld [vmem:[#allocation2 + $0x1d0] sm:$0xff] }
  0xaa   : > { %2212 = vmatpush1.bf16.msra.mxu0 %v4907_v10  ;;  %2294 = vmatpush1.bf16.msra.mxu1 %v4909_v11  ;;  %v570_v10 = vld [vmem:[#allocation2 + $0x30] sm:$0xff]  ;;  %v567_v11 = vld [vmem:[#allocation2 + $0x18] sm:$0xff] }
  0xab   : > { %2213 = vmatprep.subr.bf16.mxu0 %v4916_v13  ;;  %2295 = vmatprep.subr.bf16.mxu1 %v4918_v18  ;;  %v4974_v13 = vcombine.high %v813_v3, %v817_v5  ;;  %v4728_v18 = vcombine.high %v566_v9, %v570_v10  ;;  %v4727_v25 = vcombine.low %v566_v9, %v570_v10  ;;  %v626_v3 = vld [vmem:[#allocation2 + $0x1f0] sm:$0xff] }
  0xac   : > { %v4776_v5 = vcombine.high %v614_v58, %v618_v59  ;;  %v4775_v9 = vcombine.low %v614_v58, %v618_v59  ;;  %v630_v10 = vld [vmem:[#allocation2 + $0x210] sm:$0xff]  ;;  %v671_v58 = vld [vmem:[#allocation2 + $0x358] sm:$0xff] }
  0xad   : > { %v675_v59 = vld [vmem:[#allocation2 + $0x378] sm:$0xff] }
  0xae   : > { %2214 = vmatpush1.bf16.msra.mxu0 %v4915_v20  ;;  %2296 = vmatpush1.bf16.msra.mxu1 %v4917_v21  ;;  %v578_v20 = vld [vmem:[#allocation2 + $0x70] sm:$0xff]  ;;  %v575_v21 = vld [vmem:[#allocation2 + $0x58] sm:$0xff] }
  0xaf   : > { %2215 = vmatprep.subr.bf16.mxu0 %v4924_v22  ;;  %2297 = vmatprep.subr.bf16.mxu1 %v4926_v26  ;;  %v4730_v22 = vcombine.high %v567_v11, %v571_v14  ;;  %v582_v26 = vld [vmem:[#allocation2 + $0x90] sm:$0xff]  ;;  %v4738_v32 = vcombine.high %v575_v21, %v579_v23  ;;  %v4735_v33 = vcombine.low %v574_v19, %v578_v20 }
  0xb0   : > { %v4737_v35 = vcombine.low %v575_v21, %v579_v23  ;;  %v4743_v40 = vcombine.low %v582_v26, %v586_v27  ;;  %v642_v21 = vld [vmem:[#allocation2 + $0x270] sm:$0xff] }
  0xb2   : > { %2216 = vmatpush1.bf16.msra.mxu0 %v4923_v28  ;;  %2298 = vmatpush1.bf16.msra.mxu1 %v4925_v29  ;;  %v4729_v28 = vcombine.low %v567_v11, %v571_v14  ;;  %v4736_v29 = vcombine.high %v574_v19, %v578_v20  ;;  %v634_v11 = vld [vmem:[#allocation2 + $0x230] sm:$0xff]  ;;  %v4784_v14 = vcombine.high %v622_v2, %v626_v3 }
  0xb3   : > { %2217 = vmatprep.subr.bf16.mxu0 %v4932_v30  ;;  %2299 = vmatprep.subr.bf16.mxu1 %v4934_v34  ;;  %v583_v30 = vld [vmem:[#allocation2 + $0x98] sm:$0xff]  ;;  %v594_v34 = vld [vmem:[#allocation2 + $0xf0] sm:$0xff]  ;;  %v4783_v19 = vcombine.low %v622_v2, %v626_v3  ;;  %v4792_v23 = vcombine.high %v630_v10, %v634_v11 }
  0xb4   : > { %v4745_v43 = vcombine.low %v583_v30, %v587_v31  ;;  %v4751_v48 = vcombine.low %v590_v15, %v594_v34  ;;  %v638_v20 = vld [vmem:[#allocation2 + $0x250] sm:$0xff]  ;;  %v679_v2 = vld [vmem:[#allocation2 + $0x398] sm:$0xff] }
  0xb5   : > { %v683_v3 = vld [vmem:[#allocation2 + $0x3b8] sm:$0xff] }
  0xb6   : > { %2218 = vmatpush1.bf16.msra.mxu0 %v4931_v36  ;;  %2300 = vmatpush1.bf16.msra.mxu1 %v4933_v37  ;;  %v4744_v36 = vcombine.high %v582_v26, %v586_v27  ;;  %v591_v37 = vld [vmem:[#allocation2 + $0xd8] sm:$0xff] }
  0xb7   : > { %2219 = vmatprep.subr.bf16.mxu0 %v4940_v38  ;;  %2301 = vmatprep.subr.bf16.mxu1 %v4942_v42  ;;  %v4746_v38 = vcombine.high %v583_v30, %v587_v31  ;;  %v602_v42 = vld [vmem:[#allocation2 + $0x130] sm:$0xff]  ;;  %v4754_v47 = vcombine.high %v591_v37, %v595_v39  ;;  %v4753_v51 = vcombine.low %v591_v37, %v595_v39  ;;  %v643_v26 = vld [vmem:[#allocation2 + $0x278] sm:$0xff] }
  0xb8   : > { %v4759_v56 = vcombine.low %v598_v41, %v602_v42  ;;  %v650_v30 = vld [vmem:[#allocation2 + $0x2b0] sm:$0xff] }
  0xb9   : > { %v658_v37 = vld [vmem:[#allocation2 + $0x2f0] sm:$0xff] }
  0xba   : > { %2220 = vmatpush1.bf16.msra.mxu0 %v4939_v44  ;;  %2302 = vmatpush1.bf16.msra.mxu1 %v4941_v45  ;;  %v4752_v44 = vcombine.high %v590_v15, %v594_v34  ;;  %v599_v45 = vld [vmem:[#allocation2 + $0x118] sm:$0xff] }
  0xbb   : > { %2221 = vmatprep.subr.bf16.mxu0 %v4948_v46  ;;  %2303 = vmatprep.subr.bf16.mxu1 %v4950_v50  ;;  %v603_v46 = vld [vmem:[#allocation2 + $0x138] sm:$0xff]  ;;  %v610_v50 = vld [vmem:[#allocation2 + $0x170] sm:$0xff] }
  0xbc   : > { %v4768_v61 = vcombine.high %v606_v49, %v610_v50  ;;  %v4767_v1 = vcombine.low %v606_v49, %v610_v50  ;;  %v651_v15 = vld [vmem:[#allocation2 + $0x2b8] sm:$0xff] }
  0xbd   : > { %v667_v49 = vld [vmem:[#allocation2 + $0x338] sm:$0xff] }
  0xbe   : > { %2222 = vmatpush1.bf16.msra.mxu0 %v4947_v52  ;;  %2304 = vmatpush1.bf16.msra.mxu1 %v4949_v54  ;;  %v607_v52 = vld [vmem:[#allocation2 + $0x158] sm:$0xff] }
  0xbf   : > { %2223 = vmatprep.subr.bf16.mxu0 %v4956_v55  ;;  %2305 = vmatprep.subr.bf16.mxu1 %v4958_v60  ;;  %v611_v54 = vld [vmem:[#allocation2 + $0x178] sm:$0xff]  ;;  %v4762_v55 = vcombine.high %v599_v45, %v603_v46  ;;  %v4761_v60 = vcombine.low %v599_v45, %v603_v46  ;;  %v666_v45 = vld [vmem:[#allocation2 + $0x330] sm:$0xff] }
  0xc2   : > { %2224 = vmatpush1.bf16.msra.mxu0 %v4955_v62  ;;  %2306 = vmatpush1.bf16.msra.mxu1 %v4957_v63  ;;  %v615_v62 = vld [vmem:[#allocation2 + $0x198] sm:$0xff] }
  0xc3   : > { %2225 = vmatprep.subr.bf16.mxu0 %v4964_v0  ;;  %2307 = vmatprep.subr.bf16.mxu1 %v4966_v4  ;;  %v619_v63 = vld [vmem:[#allocation2 + $0x1b8] sm:$0xff]  ;;  %v4770_v0 = vcombine.high %v607_v52, %v611_v54  ;;  %v4769_v4 = vcombine.low %v607_v52, %v611_v54 }
  0xc6   : > { %2226 = vmatpush1.bf16.msra.mxu0 %v4963_v6  ;;  %2308 = vmatpush1.bf16.msra.mxu1 %v4965_v7  ;;  %v623_v6 = vld [vmem:[#allocation2 + $0x1d8] sm:$0xff] }
  0xc7   : > { %2227 = vmatprep.subr.bf16.mxu0 %v4972_v8  ;;  %2309 = vmatprep.subr.bf16.mxu1 %v4974_v13  ;;  %v627_v7 = vld [vmem:[#allocation2 + $0x1f8] sm:$0xff]  ;;  %v4778_v8 = vcombine.high %v615_v62, %v619_v63  ;;  %v4777_v13 = vcombine.low %v615_v62, %v619_v63  ;;  %v4834_v63 = vcombine.high %v671_v58, %v675_v59 }
  0xca   : > { %2228 = vmatpush1.bf16.msra.mxu0 %v4971_v16  ;;  %2310 = vmatpush1.bf16.msra.mxu1 %v4973_v17  ;;  %v631_v16 = vld [vmem:[#allocation2 + $0x218] sm:$0xff] }
  0xcb   : > { %2320 = vmatprep.subr.bf16.mxu0 %v4728_v18  ;;  %2402 = vmatprep.subr.bf16.mxu1 %v4730_v22  ;;  %v635_v17 = vld [vmem:[#allocation2 + $0x238] sm:$0xff]  ;;  %v4786_v18 = vcombine.high %v623_v6, %v627_v7  ;;  %v4785_v22 = vcombine.low %v623_v6, %v627_v7  ;;  %v4842_v7 = vcombine.high %v679_v2, %v683_v3 }
  0xcc   : > { %v4794_v27 = vcombine.high %v631_v16, %v635_v17  ;;  %v4793_v31 = vcombine.low %v631_v16, %v635_v17 }
  0xcd   : > { %2230 = vmatmul.mubr.bf16.vlgmr.msra.gmra.mrb[0].mxu0 %v5901_v24  ;;  %2312 = vmatmul.mubr.bf16.vlgmr.msra.gmra.mrb[0].mxu1 %v5901_v24 }
  0xce   : > { %2321 = vmatpush1.bf16.msra.mxu0 %v4727_v25  ;;  %2403 = vmatpush1.bf16.msra.mxu1 %v4729_v28  ;;  %v639_v25 = vld [vmem:[#allocation2 + $0x258] sm:$0xff]  ;;  %v4791_v28 = vcombine.low %v630_v10, %v634_v11 }
  0xcf   : > { %2322 = vmatprep.subr.bf16.mxu0 %v4736_v29  ;;  %2404 = vmatprep.subr.bf16.mxu1 %v4738_v32  ;;  %v646_v29 = vld [vmem:[#allocation2 + $0x290] sm:$0xff]  ;;  %v4800_v32 = vcombine.high %v638_v20, %v642_v21  ;;  %v4802_v34 = vcombine.high %v639_v25, %v643_v26  ;;  %v687_v10 = vld [vmem:[#allocation2 + $0x3d8] sm:$0xff] }
  0xd0   : > { %2352 = vmatprep.mubr.bf16.mxu0 %v5880_v57  ;;  %2434 = vmatprep.mubr.bf16.mxu1 %v5880_v57  ;;  %v4760_v57 = vcombine.high %v598_v41, %v602_v42  ;;  %v4808_v39 = vcombine.high %v646_v29, %v650_v30  ;;  %v659_v41 = vld [vmem:[#allocation2 + $0x2f8] sm:$0xff] }
  0xd1   : > { %v691_v11 = vld [vmem:[#allocation2 + $0x3f8] sm:$0xff] }
  0xd2   : > { %2323 = vmatpush1.bf16.msra.mxu0 %v4735_v33  ;;  %2405 = vmatpush1.bf16.msra.mxu1 %v4737_v35  ;;  %v647_v33 = vld [vmem:[#allocation2 + $0x298] sm:$0xff]  ;;  %v4799_v35 = vcombine.low %v638_v20, %v642_v21  ;;  %v4850_v17 = vcombine.high %v687_v10, %v691_v11 }
  0xd3   : > { %2324 = vmatprep.subr.bf16.mxu0 %v4744_v36  ;;  %2406 = vmatprep.subr.bf16.mxu1 %v4746_v38  ;;  %v654_v36 = vld [vmem:[#allocation2 + $0x2d0] sm:$0xff]  ;;  %v4801_v38 = vcombine.low %v639_v25, %v643_v26  ;;  %v4810_v42 = vcombine.high %v647_v33, %v651_v15  ;;  %v4809_v46 = vcombine.low %v647_v33, %v651_v15  ;;  %v695_v20 = vld [vmem:[#allocation2 + $0x418] sm:$0xff] }
  0xd4   : > { %v699_v21 = vld [vmem:[#allocation2 + $0x438] sm:$0xff] }
  0xd5   : > { %v4858_v26 = vcombine.high %v695_v20, %v699_v21 }
  0xd6   : > { %2325 = vmatpush1.bf16.msra.mxu0 %v4743_v40  ;;  %2407 = vmatpush1.bf16.msra.mxu1 %v4745_v43  ;;  %v655_v40 = vld [vmem:[#allocation2 + $0x2d8] sm:$0xff]  ;;  %v4807_v43 = vcombine.low %v646_v29, %v650_v30 }
  0xd7   : > { %2326 = vmatprep.subr.bf16.mxu0 %v4752_v44  ;;  %2408 = vmatprep.subr.bf16.mxu1 %v4754_v47  ;;  %v662_v44 = vld [vmem:[#allocation2 + $0x310] sm:$0xff]  ;;  %v4816_v47 = vcombine.high %v654_v36, %v658_v37  ;;  %v4818_v50 = vcombine.high %v655_v40, %v659_v41  ;;  %v703_v29 = vld [vmem:[#allocation2 + $0x458] sm:$0xff] }
  0xd8   : > { %v4824_v52 = vcombine.high %v662_v44, %v666_v45  ;;  %v707_v30 = vld [vmem:[#allocation2 + $0x478] sm:$0xff] }
  0xd9   : > { %v4866_v15 = vcombine.high %v703_v29, %v707_v30 }
  0xda   : > { %2327 = vmatpush1.bf16.msra.mxu0 %v4751_v48  ;;  %2409 = vmatpush1.bf16.msra.mxu1 %v4753_v51  ;;  %v663_v48 = vld [vmem:[#allocation2 + $0x318] sm:$0xff]  ;;  %v4815_v51 = vcombine.low %v654_v36, %v658_v37 }
  0xdb   : > { %2328 = vmatprep.subr.bf16.mxu0 %v4760_v57  ;;  %2410 = vmatprep.subr.bf16.mxu1 %v4762_v55  ;;  %v4817_v57 = vcombine.low %v655_v40, %v659_v41  ;;  %v4826_v54 = vcombine.high %v663_v48, %v667_v49  ;;  %v670_v55 = vld [vmem:[#allocation2 + $0x350] sm:$0xff]  ;;  %v711_v36 = vld [vmem:[#allocation2 + $0x498] sm:$0xff] }
  0xdc   : > { %v715_v37 = vld [vmem:[#allocation2 + $0x4b8] sm:$0xff] }
  0xdd   : > { %v4874_v41 = vcombine.high %v711_v36, %v715_v37 }
  0xde   : > { %2329 = vmatpush1.bf16.msra.mxu0 %v4759_v56  ;;  %2411 = vmatpush1.bf16.msra.mxu1 %v4761_v60  ;;  %v674_v56 = vld [vmem:[#allocation2 + $0x370] sm:$0xff]  ;;  %v4823_v60 = vcombine.low %v662_v44, %v666_v45  ;;  %v719_v44 = vld [vmem:[#allocation2 + $0x4d8] sm:$0xff] }
  0xdf   : > { %2330 = vmatprep.subr.bf16.mxu0 %v4768_v61  ;;  %2412 = vmatprep.subr.bf16.mxu1 %v4770_v0  ;;  %v4825_v61 = vcombine.low %v663_v48, %v667_v49  ;;  %v4832_v62 = vcombine.high %v670_v55, %v674_v56  ;;  %v678_v0 = vld [vmem:[#allocation2 + $0x390] sm:$0xff]  ;;  %v723_v45 = vld [vmem:[#allocation2 + $0x4f8] sm:$0xff] }
  0xe0   : > { %v4882_v48 = vcombine.high %v719_v44, %v723_v45  ;;  %v726_v49 = vld [vmem:[#allocation2 + $0x510] sm:$0xff] }
  0xe2   : > { %2331 = vmatpush1.bf16.msra.mxu0 %v4767_v1  ;;  %2413 = vmatpush1.bf16.msra.mxu1 %v4769_v4  ;;  %v682_v1 = vld [vmem:[#allocation2 + $0x3b0] sm:$0xff]  ;;  %v4831_v4 = vcombine.low %v670_v55, %v674_v56 }
  0xe3   : > { %2332 = vmatprep.subr.bf16.mxu0 %v4776_v5  ;;  %2414 = vmatprep.subr.bf16.mxu1 %v4778_v8  ;;  %v4833_v5 = vcombine.low %v671_v58, %v675_v59  ;;  %v4840_v6 = vcombine.high %v678_v0, %v682_v1  ;;  %v686_v8 = vld [vmem:[#allocation2 + $0x3d0] sm:$0xff]  ;;  %v735_v59 = vld [vmem:[#allocation2 + $0x558] sm:$0xff] }
  0xe4   : > { %v734_v56 = vld [vmem:[#allocation2 + $0x550] sm:$0xff] }
  0xe5   : > { %v738_v58 = vld [vmem:[#allocation2 + $0x570] sm:$0xff] }
  0xe6   : > { %2333 = vmatpush1.bf16.msra.mxu0 %v4775_v9  ;;  %2415 = vmatpush1.bf16.msra.mxu1 %v4777_v13  ;;  %v690_v9 = vld [vmem:[#allocation2 + $0x3f0] sm:$0xff]  ;;  %v4839_v13 = vcombine.low %v678_v0, %v682_v1 }
  0xe7   : > { %2334 = vmatprep.subr.bf16.mxu0 %v4784_v14  ;;  %2416 = vmatprep.subr.bf16.mxu1 %v4786_v18  ;;  %v4841_v14 = vcombine.low %v679_v2, %v683_v3  ;;  %v4848_v16 = vcombine.high %v686_v8, %v690_v9  ;;  %v694_v18 = vld [vmem:[#allocation2 + $0x410] sm:$0xff]  ;;  %v743_v3 = vld [vmem:[#allocation2 + $0x598] sm:$0xff] }
  0xe8   : > { %v742_v1 = vld [vmem:[#allocation2 + $0x590] sm:$0xff] }
  0xe9   : > { %v746_v2 = vld [vmem:[#allocation2 + $0x5b0] sm:$0xff] }
  0xea   : > { %2335 = vmatpush1.bf16.msra.mxu0 %v4783_v19  ;;  %2417 = vmatpush1.bf16.msra.mxu1 %v4785_v22  ;;  %v698_v19 = vld [vmem:[#allocation2 + $0x430] sm:$0xff]  ;;  %v4847_v22 = vcombine.low %v686_v8, %v690_v9 }
  0xeb   : > { %2336 = vmatprep.subr.bf16.mxu0 %v4792_v23  ;;  %2418 = vmatprep.subr.bf16.mxu1 %v4794_v27  ;;  %v4849_v23 = vcombine.low %v687_v10, %v691_v11  ;;  %v4856_v25 = vcombine.high %v694_v18, %v698_v19  ;;  %v702_v27 = vld [vmem:[#allocation2 + $0x450] sm:$0xff]  ;;  %v751_v11 = vld [vmem:[#allocation2 + $0x5d8] sm:$0xff] }
  0xec   : > { %v750_v9 = vld [vmem:[#allocation2 + $0x5d0] sm:$0xff] }
  0xed   : > { %v754_v10 = vld [vmem:[#allocation2 + $0x5f0] sm:$0xff] }
  0xee   : > { %2337 = vmatpush1.bf16.msra.mxu0 %v4791_v28  ;;  %2419 = vmatpush1.bf16.msra.mxu1 %v4793_v31  ;;  %v706_v28 = vld [vmem:[#allocation2 + $0x470] sm:$0xff]  ;;  %v4855_v31 = vcombine.low %v694_v18, %v698_v19 }
  0xef   : > { %2338 = vmatprep.subr.bf16.mxu0 %v4800_v32  ;;  %2420 = vmatprep.subr.bf16.mxu1 %v4802_v34  ;;  %v4857_v32 = vcombine.low %v695_v20, %v699_v21  ;;  %v4864_v33 = vcombine.high %v702_v27, %v706_v28  ;;  %v710_v34 = vld [vmem:[#allocation2 + $0x490] sm:$0xff]  ;;  %v759_v21 = vld [vmem:[#allocation2 + $0x618] sm:$0xff] }
  0xf0   : > { %v758_v19 = vld [vmem:[#allocation2 + $0x610] sm:$0xff] }
  0xf1   : > { %v762_v20 = vld [vmem:[#allocation2 + $0x630] sm:$0xff] }
  0xf2   : > { %2339 = vmatpush1.bf16.msra.mxu0 %v4799_v35  ;;  %2421 = vmatpush1.bf16.msra.mxu1 %v4801_v38  ;;  %v714_v35 = vld [vmem:[#allocation2 + $0x4b0] sm:$0xff]  ;;  %v4863_v38 = vcombine.low %v702_v27, %v706_v28 }
  0xf3   : > { %2340 = vmatprep.subr.bf16.mxu0 %v4808_v39  ;;  %2422 = vmatprep.subr.bf16.mxu1 %v4810_v42  ;;  %v4865_v39 = vcombine.low %v703_v29, %v707_v30  ;;  %v4872_v40 = vcombine.high %v710_v34, %v714_v35  ;;  %v718_v42 = vld [vmem:[#allocation2 + $0x4d0] sm:$0xff]  ;;  %v767_v30 = vld [vmem:[#allocation2 + $0x658] sm:$0xff] }
  0xf4   : > { %v766_v28 = vld [vmem:[#allocation2 + $0x650] sm:$0xff] }
  0xf5   : > { %v770_v29 = vld [vmem:[#allocation2 + $0x670] sm:$0xff] }
  0xf6   : > { %2341 = vmatpush1.bf16.msra.mxu0 %v4807_v43  ;;  %2423 = vmatpush1.bf16.msra.mxu1 %v4809_v46  ;;  %v722_v43 = vld [vmem:[#allocation2 + $0x4f0] sm:$0xff]  ;;  %v4871_v46 = vcombine.low %v710_v34, %v714_v35 }
  0xf7   : > { %2342 = vmatprep.subr.bf16.mxu0 %v4816_v47  ;;  %2424 = vmatprep.subr.bf16.mxu1 %v4818_v50  ;;  %v4880_v47 = vcombine.high %v718_v42, %v722_v43  ;;  %v730_v50 = vld [vmem:[#allocation2 + $0x530] sm:$0xff] }
  0xf8   : > { %v4888_v55 = vcombine.high %v726_v49, %v730_v50  ;;  %v774_v35 = vld [vmem:[#allocation2 + $0x690] sm:$0xff] }
  0xfa   : > { %2343 = vmatpush1.bf16.msra.mxu0 %v4815_v51  ;;  %2425 = vmatpush1.bf16.msra.mxu1 %v4817_v57  ;;  %v727_v51 = vld [vmem:[#allocation2 + $0x518] sm:$0xff] }
  0xfb   : > { %2344 = vmatprep.subr.bf16.mxu0 %v4824_v52  ;;  %2426 = vmatprep.subr.bf16.mxu1 %v4826_v54  ;;  %v731_v57 = vld [vmem:[#allocation2 + $0x538] sm:$0xff]  ;;  %v4879_v52 = vcombine.low %v718_v42, %v722_v43  ;;  %v4881_v54 = vcombine.low %v719_v44, %v723_v45  ;;  %v782_v43 = vld [vmem:[#allocation2 + $0x6d0] sm:$0xff] }
  0xfc   : > { %v786_v44 = vld [vmem:[#allocation2 + $0x6f0] sm:$0xff]  ;;  %v783_v45 = vld [vmem:[#allocation2 + $0x6d8] sm:$0xff] }
  0xfe   : > { %2345 = vmatpush1.bf16.msra.mxu0 %v4823_v60  ;;  %2427 = vmatpush1.bf16.msra.mxu1 %v4825_v61  ;;  %v739_v60 = vld [vmem:[#allocation2 + $0x578] sm:$0xff]  ;;  %v4887_v61 = vcombine.low %v726_v49, %v730_v50  ;;  %v790_v50 = vld [vmem:[#allocation2 + $0x710] sm:$0xff] }
  0xff   : > { %2346 = vmatprep.subr.bf16.mxu0 %v4832_v62  ;;  %2428 = vmatprep.subr.bf16.mxu1 %v4834_v63  ;;  %v4889_v62 = vcombine.low %v727_v51, %v731_v57  ;;  %v4896_v63 = vcombine.high %v734_v56, %v738_v58  ;;  %v4898_v0 = vcombine.high %v735_v59, %v739_v60 }
 0x102   : > { %2347 = vmatpush1.bf16.msra.mxu0 %v4831_v4  ;;  %2429 = vmatpush1.bf16.msra.mxu1 %v4833_v5  ;;  %v747_v4 = vld [vmem:[#allocation2 + $0x5b8] sm:$0xff]  ;;  %v4895_v5 = vcombine.low %v734_v56, %v738_v58  ;;  %v798_v58 = vld [vmem:[#allocation2 + $0x750] sm:$0xff] }
 0x103   : > { %2348 = vmatprep.subr.bf16.mxu0 %v4840_v6  ;;  %2430 = vmatprep.subr.bf16.mxu1 %v4842_v7  ;;  %v4897_v6 = vcombine.low %v735_v59, %v739_v60  ;;  %v4904_v7 = vcombine.high %v742_v1, %v746_v2  ;;  %v4906_v8 = vcombine.high %v743_v3, %v747_v4  ;;  %v802_v59 = vld [vmem:[#allocation2 + $0x770] sm:$0xff]  ;;  %v799_v60 = vld [vmem:[#allocation2 + $0x758] sm:$0xff] }
 0x106   : > { %2349 = vmatpush1.bf16.msra.mxu0 %v4839_v13  ;;  %2431 = vmatpush1.bf16.msra.mxu1 %v4841_v14  ;;  %v755_v13 = vld [vmem:[#allocation2 + $0x5f8] sm:$0xff]  ;;  %v4903_v14 = vcombine.low %v742_v1, %v746_v2  ;;  %v806_v2 = vld [vmem:[#allocation2 + $0x790] sm:$0xff] }
 0x107   : > { %2350 = vmatprep.subr.bf16.mxu0 %v4848_v16  ;;  %2432 = vmatprep.subr.bf16.mxu1 %v4850_v17  ;;  %v4905_v16 = vcombine.low %v743_v3, %v747_v4  ;;  %v4912_v17 = vcombine.high %v750_v9, %v754_v10  ;;  %v4914_v18 = vcombine.high %v751_v11, %v755_v13  ;;  %v810_v3 = vld [vmem:[#allocation2 + $0x7b0] sm:$0xff]  ;;  %v807_v4 = vld [vmem:[#allocation2 + $0x798] sm:$0xff] }
 0x10a   : > { %2351 = vmatpush1.bf16.msra.mxu0 %v4847_v22  ;;  %2433 = vmatpush1.bf16.msra.mxu1 %v4849_v23  ;;  %v763_v22 = vld [vmem:[#allocation2 + $0x638] sm:$0xff]  ;;  %v4911_v23 = vcombine.low %v750_v9, %v754_v10  ;;  %v814_v10 = vld [vmem:[#allocation2 + $0x7d0] sm:$0xff] }
 0x10b   : > { %2361 = vmatprep.subr.bf16.mxu0 %v4856_v25  ;;  %2443 = vmatprep.subr.bf16.mxu1 %v4858_v26  ;;  %v4913_v25 = vcombine.low %v751_v11, %v755_v13  ;;  %v4920_v26 = vcombine.high %v758_v19, %v762_v20  ;;  %v4922_v27 = vcombine.high %v759_v21, %v763_v22  ;;  %v818_v11 = vld [vmem:[#allocation2 + $0x7f0] sm:$0xff]  ;;  %v815_v13 = vld [vmem:[#allocation2 + $0x7d8] sm:$0xff] }
 0x10d   : > { %2353 = vmatmul.mubr.bf16.vlgmr.msra.gmra.mrb[4].mxu0 %v5886_v12  ;;  %2435 = vmatmul.mubr.bf16.vlgmr.msra.gmra.mrb[4].mxu1 %v5886_v12  ;;  %v4873_v12 = vcombine.low %v711_v36, %v715_v37  ;;  %v778_v36 = vld [vmem:[#allocation2 + $0x6b0] sm:$0xff]  ;;  %v775_v37 = vld [vmem:[#allocation2 + $0x698] sm:$0xff] }
 0x10e   : > { %2362 = vmatpush1.bf16.msra.mxu0 %v4855_v31  ;;  %2444 = vmatpush1.bf16.msra.mxu1 %v4857_v32  ;;  %v771_v31 = vld [vmem:[#allocation2 + $0x678] sm:$0xff]  ;;  %v4919_v32 = vcombine.low %v758_v19, %v762_v20  ;;  %v4975_v20 = vcombine.low %v814_v10, %v818_v11 }
 0x10f   : > { %2363 = vmatprep.subr.bf16.mxu0 %v4864_v33  ;;  %2445 = vmatprep.subr.bf16.mxu1 %v4866_v15  ;;  %v4921_v33 = vcombine.low %v759_v21, %v763_v22  ;;  %v4928_v15 = vcombine.high %v766_v28, %v770_v29  ;;  %v4930_v34 = vcombine.high %v767_v30, %v771_v31  ;;  %v5340_v22 = vld [vmem:[#allocation4 + $0x4] ss:$16 sps:$4 sm:$0xff]  }
 0x110   : > { %2393 = vmatprep.mubr.bf16.mxu0 %v5893_v53  ;;  %2475 = vmatprep.mubr.bf16.mxu1 %v5893_v53  ;;  %v4890_v53 = vcombine.high %v727_v51, %v731_v57  ;;  %v794_v51 = vld [vmem:[#allocation2 + $0x730] sm:$0xff]  ;;  %v791_v57 = vld [vmem:[#allocation2 + $0x718] sm:$0xff] }
 0x112   : > { %2364 = vmatpush1.bf16.msra.mxu0 %v4863_v38  ;;  %2446 = vmatpush1.bf16.msra.mxu1 %v4865_v39  ;;  %v779_v38 = vld [vmem:[#allocation2 + $0x6b8] sm:$0xff]  ;;  %v4927_v39 = vcombine.low %v766_v28, %v770_v29  ;;  %v5344_v29 = vld [vmem:[#allocation4 + $0x20] ss:$16 sps:$4 sm:$0xff]  }
 0x113   : > { %2365 = vmatprep.subr.bf16.mxu0 %v4872_v40  ;;  %2447 = vmatprep.subr.bf16.mxu1 %v4874_v41  ;;  %v4929_v40 = vcombine.low %v767_v30, %v771_v31  ;;  %v4936_v41 = vcombine.high %v774_v35, %v778_v36  ;;  %v4938_v42 = vcombine.high %v775_v37, %v779_v38  ;;  %v5349_v28 = vld [vmem:[#allocation4 + $0x2c] ss:$16 sps:$4 sm:$0xff]   ;;  %v5347_v30 = vld [vmem:[#allocation4 + $0x28] ss:$16 sps:$4 sm:$0xff]   ;;  %v5352_v31 = vld [vmem:[#allocation4 + $0x44] ss:$16 sps:$4 sm:$0xff]  }
 0x116   : > { %2366 = vmatpush1.bf16.msra.mxu0 %v4871_v46  ;;  %2448 = vmatpush1.bf16.msra.mxu1 %v4873_v12  ;;  %v787_v46 = vld [vmem:[#allocation2 + $0x6f8] sm:$0xff]  ;;  %v4935_v12 = vcombine.low %v774_v35, %v778_v36  ;;  %v5356_v36 = vld [vmem:[#allocation4 + $0x60] ss:$16 sps:$4 sm:$0xff]  }
 0x117   : > { %2367 = vmatprep.subr.bf16.mxu0 %v4880_v47  ;;  %2449 = vmatprep.subr.bf16.mxu1 %v4882_v48  ;;  %v4937_v47 = vcombine.low %v775_v37, %v779_v38  ;;  %v4944_v48 = vcombine.high %v782_v43, %v786_v44  ;;  %v4946_v49 = vcombine.high %v783_v45, %v787_v46  ;;  %v5361_v35 = vld [vmem:[#allocation4 + $0x6c] ss:$16 sps:$4 sm:$0xff]   ;;  %v5364_v37 = vld [vmem:[#allocation4 + $0x84] ss:$16 sps:$4 sm:$0xff]  }
 0x118   : > { %v5367_v38 = vld [vmem:[#allocation4 + $0x8c] ss:$16 sps:$4 sm:$0xff]  }
 0x11a   : > { %2368 = vmatpush1.bf16.msra.mxu0 %v4879_v52  ;;  %2450 = vmatpush1.bf16.msra.mxu1 %v4881_v54  ;;  %v795_v52 = vld [vmem:[#allocation2 + $0x738] sm:$0xff]  ;;  %v4943_v54 = vcombine.low %v782_v43, %v786_v44  ;;  %v5368_v43 = vld [vmem:[#allocation4 + $0xa0] ss:$16 sps:$4 sm:$0xff]  }
 0x11b   : > { %2369 = vmatprep.subr.bf16.mxu0 %v4888_v55  ;;  %2451 = vmatprep.subr.bf16.mxu1 %v4890_v53  ;;  %v4945_v55 = vcombine.low %v783_v45, %v787_v46  ;;  %v4952_v53 = vcombine.high %v790_v50, %v794_v51  ;;  %v4954_v56 = vcombine.high %v791_v57, %v795_v52  ;;  %v5371_v44 = vld [vmem:[#allocation4 + $0xa8] ss:$16 sps:$4 sm:$0xff]   ;;  %v5376_v45 = vld [vmem:[#allocation4 + $0xc4] ss:$16 sps:$4 sm:$0xff]   ;;  %v5379_v46 = vld [vmem:[#allocation4 + $0xcc] ss:$16 sps:$4 sm:$0xff]  }
 0x11e   : > { %2370 = vmatpush1.bf16.msra.mxu0 %v4887_v61  ;;  %2452 = vmatpush1.bf16.msra.mxu1 %v4889_v62  ;;  %v803_v61 = vld [vmem:[#allocation2 + $0x778] sm:$0xff]  ;;  %v4951_v62 = vcombine.low %v790_v50, %v794_v51  ;;  %v5380_v50 = vld [vmem:[#allocation4 + $0xe0] ss:$16 sps:$4 sm:$0xff]  }
 0x11f   : > { %2371 = vmatprep.subr.bf16.mxu0 %v4896_v63  ;;  %2453 = vmatprep.subr.bf16.mxu1 %v4898_v0  ;;  %v4953_v63 = vcombine.low %v791_v57, %v795_v52  ;;  %v4960_v0 = vcombine.high %v798_v58, %v802_v59  ;;  %v4962_v1 = vcombine.high %v799_v60, %v803_v61  ;;  %v5383_v51 = vld [vmem:[#allocation4 + $0xe8] ss:$16 sps:$4 sm:$0xff]   ;;  %v5388_v57 = vld [vmem:[#allocation4 + $0x104] ss:$16 sps:$4 sm:$0xff]   ;;  %v5391_v52 = vld [vmem:[#allocation4 + $0x10c] ss:$16 sps:$4 sm:$0xff]  }
 0x122   : > { %2372 = vmatpush1.bf16.msra.mxu0 %v4895_v5  ;;  %2454 = vmatpush1.bf16.msra.mxu1 %v4897_v6  ;;  %v811_v5 = vld [vmem:[#allocation2 + $0x7b8] sm:$0xff]  ;;  %v4959_v6 = vcombine.low %v798_v58, %v802_v59  ;;  %v5392_v58 = vld [vmem:[#allocation4 + $0x120] ss:$16 sps:$4 sm:$0xff]  }
 0x123   : > { %2373 = vmatprep.subr.bf16.mxu0 %v4904_v7  ;;  %2455 = vmatprep.subr.bf16.mxu1 %v4906_v8  ;;  %v4961_v7 = vcombine.low %v799_v60, %v803_v61  ;;  %v4968_v8 = vcombine.high %v806_v2, %v810_v3  ;;  %v4970_v9 = vcombine.high %v807_v4, %v811_v5  ;;  %v5395_v59 = vld [vmem:[#allocation4 + $0x128] ss:$16 sps:$4 sm:$0xff]   ;;  %v5400_v60 = vld [vmem:[#allocation4 + $0x144] ss:$16 sps:$4 sm:$0xff]   ;;  %v5403_v61 = vld [vmem:[#allocation4 + $0x14c] ss:$16 sps:$4 sm:$0xff]  }
 0x126   : > { %2374 = vmatpush1.bf16.msra.mxu0 %v4903_v14  ;;  %2456 = vmatpush1.bf16.msra.mxu1 %v4905_v16  ;;  %v819_v14 = vld [vmem:[#allocation2 + $0x7f8] sm:$0xff]  ;;  %v4967_v16 = vcombine.low %v806_v2, %v810_v3  ;;  %v5404_v2 = vld [vmem:[#allocation4 + $0x160] ss:$16 sps:$4 sm:$0xff]  }
 0x127   : > { %2375 = vmatprep.subr.bf16.mxu0 %v4912_v17  ;;  %2457 = vmatprep.subr.bf16.mxu1 %v4914_v18  ;;  %v4969_v17 = vcombine.low %v807_v4, %v811_v5  ;;  %v4976_v18 = vcombine.high %v814_v10, %v818_v11  ;;  %v4978_v19 = vcombine.high %v815_v13, %v819_v14  ;;  %v5407_v3 = vld [vmem:[#allocation4 + $0x168] ss:$16 sps:$4 sm:$0xff]   ;;  %v5412_v4 = vld [vmem:[#allocation4 + $0x184] ss:$16 sps:$4 sm:$0xff]   ;;  %v5415_v5 = vld [vmem:[#allocation4 + $0x18c] ss:$16 sps:$4 sm:$0xff]  }
 0x128   : > { %v4977_v21 = vcombine.low %v815_v13, %v819_v14  ;;  %v5416_v10 = vld [vmem:[#allocation4 + $0x1a0] ss:$16 sps:$4 sm:$0xff]   ;;  %v5419_v11 = vld [vmem:[#allocation4 + $0x1a8] ss:$16 sps:$4 sm:$0xff]   ;;  %v5424_v13 = vld [vmem:[#allocation4 + $0x1c4] ss:$16 sps:$4 sm:$0xff]  }
 0x129   : > { %v5427_v14 = vld [vmem:[#allocation4 + $0x1cc] ss:$16 sps:$4 sm:$0xff]  }
 0x12a   : > { %2376 = vmatpush1.bf16.msra.mxu0 %v4911_v23  ;;  %2458 = vmatpush1.bf16.msra.mxu1 %v4913_v25  ;;  %v5343_v23 = vld [vmem:[#allocation4 + $0xc] ss:$16 sps:$4 sm:$0xff]   ;;  %v5338_v25 = vld [vmem:[#allocation4] ss:$16 sps:$4 sm:$0xff]  }
 0x12b   : > { %2377 = vmatprep.subr.bf16.mxu0 %v4920_v26  ;;  %2459 = vmatprep.subr.bf16.mxu1 %v4922_v27  ;;  %v5341_v26 = vld [vmem:[#allocation4 + $0x8] ss:$16 sps:$4 sm:$0xff]   ;;  %v5346_v27 = vld [vmem:[#allocation4 + $0x24] ss:$16 sps:$4 sm:$0xff]  }
 0x12e   : > { %2378 = vmatpush1.bf16.msra.mxu0 %v4919_v32  ;;  %2460 = vmatpush1.bf16.msra.mxu1 %v4921_v33  ;;  %v5355_v32 = vld [vmem:[#allocation4 + $0x4c] ss:$16 sps:$4 sm:$0xff]   ;;  %v5350_v33 = vld [vmem:[#allocation4 + $0x40] ss:$16 sps:$4 sm:$0xff]  }
 0x12f   : > { %2379 = vmatprep.subr.bf16.mxu0 %v4928_v15  ;;  %2461 = vmatprep.subr.bf16.mxu1 %v4930_v34  ;;  %v5353_v15 = vld [vmem:[#allocation4 + $0x48] ss:$16 sps:$4 sm:$0xff]   ;;  %v5358_v34 = vld [vmem:[#allocation4 + $0x64] ss:$16 sps:$4 sm:$0xff]  }
 0x132   : > { %2380 = vmatpush1.bf16.msra.mxu0 %v4927_v39  ;;  %2462 = vmatpush1.bf16.msra.mxu1 %v4929_v40  ;;  %v5362_v39 = vld [vmem:[#allocation4 + $0x80] ss:$16 sps:$4 sm:$0xff]   ;;  %v5365_v40 = vld [vmem:[#allocation4 + $0x88] ss:$16 sps:$4 sm:$0xff]  }
 0x133   : > { %2381 = vmatprep.subr.bf16.mxu0 %v4936_v41  ;;  %2463 = vmatprep.subr.bf16.mxu1 %v4938_v42  ;;  %v5370_v41 = vld [vmem:[#allocation4 + $0xa4] ss:$16 sps:$4 sm:$0xff]   ;;  %v5373_v42 = vld [vmem:[#allocation4 + $0xac] ss:$16 sps:$4 sm:$0xff]  }
 0x136   : > { %2382 = vmatpush1.bf16.msra.mxu0 %v4935_v12  ;;  %2464 = vmatpush1.bf16.msra.mxu1 %v4937_v47  ;;  %v5374_v12 = vld [vmem:[#allocation4 + $0xc0] ss:$16 sps:$4 sm:$0xff]   ;;  %v5377_v47 = vld [vmem:[#allocation4 + $0xc8] ss:$16 sps:$4 sm:$0xff]  }
 0x137   : > { %2383 = vmatprep.subr.bf16.mxu0 %v4944_v48  ;;  %2465 = vmatprep.subr.bf16.mxu1 %v4946_v49  ;;  %v5382_v48 = vld [vmem:[#allocation4 + $0xe4] ss:$16 sps:$4 sm:$0xff]   ;;  %v5385_v49 = vld [vmem:[#allocation4 + $0xec] ss:$16 sps:$4 sm:$0xff]  }
 0x13a   : > { %2384 = vmatpush1.bf16.msra.mxu0 %v4943_v54  ;;  %2466 = vmatpush1.bf16.msra.mxu1 %v4945_v55  ;;  %v5386_v54 = vld [vmem:[#allocation4 + $0x100] ss:$16 sps:$4 sm:$0xff]   ;;  %v5389_v55 = vld [vmem:[#allocation4 + $0x108] ss:$16 sps:$4 sm:$0xff]  }
 0x13b   : > { %2385 = vmatprep.subr.bf16.mxu0 %v4952_v53  ;;  %2467 = vmatprep.subr.bf16.mxu1 %v4954_v56  ;;  %v5394_v53 = vld [vmem:[#allocation4 + $0x124] ss:$16 sps:$4 sm:$0xff]   ;;  %v5397_v56 = vld [vmem:[#allocation4 + $0x12c] ss:$16 sps:$4 sm:$0xff]  }
 0x13e   : > { %2386 = vmatpush1.bf16.msra.mxu0 %v4951_v62  ;;  %2468 = vmatpush1.bf16.msra.mxu1 %v4953_v63  ;;  %v5398_v62 = vld [vmem:[#allocation4 + $0x140] ss:$16 sps:$4 sm:$0xff]   ;;  %v5401_v63 = vld [vmem:[#allocation4 + $0x148] ss:$16 sps:$4 sm:$0xff]  }
 0x13f   : > { %2387 = vmatprep.subr.bf16.mxu0 %v4960_v0  ;;  %2469 = vmatprep.subr.bf16.mxu1 %v4962_v1  ;;  %v5406_v0 = vld [vmem:[#allocation4 + $0x164] ss:$16 sps:$4 sm:$0xff]   ;;  %v5409_v1 = vld [vmem:[#allocation4 + $0x16c] ss:$16 sps:$4 sm:$0xff]  }
 0x142   : > { %2388 = vmatpush1.bf16.msra.mxu0 %v4959_v6  ;;  %2470 = vmatpush1.bf16.msra.mxu1 %v4961_v7  ;;  %v5410_v6 = vld [vmem:[#allocation4 + $0x180] ss:$16 sps:$4 sm:$0xff]   ;;  %v5413_v7 = vld [vmem:[#allocation4 + $0x188] ss:$16 sps:$4 sm:$0xff]  }
 0x143   : > { %2389 = vmatprep.subr.bf16.mxu0 %v4968_v8  ;;  %2471 = vmatprep.subr.bf16.mxu1 %v4970_v9  ;;  %v5418_v8 = vld [vmem:[#allocation4 + $0x1a4] ss:$16 sps:$4 sm:$0xff]   ;;  %v5421_v9 = vld [vmem:[#allocation4 + $0x1ac] ss:$16 sps:$4 sm:$0xff]  }
 0x146   : > { %2390 = vmatpush1.bf16.msra.mxu0 %v4967_v16  ;;  %2472 = vmatpush1.bf16.msra.mxu1 %v4969_v17  ;;  %v5422_v16 = vld [vmem:[#allocation4 + $0x1c0] ss:$16 sps:$4 sm:$0xff]   ;;  %v5425_v17 = vld [vmem:[#allocation4 + $0x1c8] ss:$16 sps:$4 sm:$0xff]  }
 0x147   : > { %2391 = vmatprep.subr.bf16.mxu0 %v4976_v18  ;;  %2473 = vmatprep.subr.bf16.mxu1 %v4978_v19  ;;  %v5430_v18 = vld [vmem:[#allocation4 + $0x1e4] ss:$16 sps:$4 sm:$0xff]   ;;  %v5433_v19 = vld [vmem:[#allocation4 + $0x1ec] ss:$16 sps:$4 sm:$0xff]  }
 0x14a   : > { %2392 = vmatpush1.bf16.msra.mxu0 %v4975_v20  ;;  %2474 = vmatpush1.bf16.msra.mxu1 %v4977_v21  ;;  %v5428_v20 = vld [vmem:[#allocation4 + $0x1e0] ss:$16 sps:$4 sm:$0xff]   ;;  %v5431_v21 = vld [vmem:[#allocation4 + $0x1e8] ss:$16 sps:$4 sm:$0xff]  }
 0x14b   : > { %3478 = vmatprep.subr.bf16.mxu0 %v5340_v22  ;;  %3560 = vmatprep.subr.bf16.mxu1 %v5343_v23  ;;  %v5436_v22 = vld [vmem:[#allocation4 + $0x204] ss:$16 sps:$4 sm:$0xff]   ;;  %v5439_v23 = vld [vmem:[#allocation4 + $0x20c] ss:$16 sps:$4 sm:$0xff]  }
 0x14d   : > { %2394 = vmatmul.mubr.bf16.vlgmr.msra.gmra.mrb[4].mxu0 %v5901_v24  ;;  %2476 = vmatmul.mubr.bf16.vlgmr.msra.gmra.mrb[4].mxu1 %v5901_v24  ;;  %v5359_v24 = vld [vmem:[#allocation4 + $0x68] ss:$16 sps:$4 sm:$0xff]  }
 0x14e   : > { %3479 = vmatpush1.bf16.msra.mxu0 %v5338_v25  ;;  %3561 = vmatpush1.bf16.msra.mxu1 %v5341_v26  ;;  %v822_v25 = vlaneseq }
 0x14f   : > { %3480 = vmatprep.subr.bf16.mxu0 %v5346_v27  ;;  %3562 = vmatprep.subr.bf16.mxu1 %v5349_v28  ;;  %v5922_v28 = vld [vmem:[%s6290_s2] sm:$0xff] }
 0x150   : > { %v5914_v26 = vshrl.u32 %v822_v25, 7 }
 0x152   : > { %3481 = vmatpush1.bf16.msra.mxu0 %v5344_v29  ;;  %3563 = vmatpush1.bf16.msra.mxu1 %v5347_v30  ;;  %v5917_v27 = vsub.s32 0, %v5914_v26  ;;  %v5925_v29 = vsub.s32 2, %v5914_v26  ;;  %v5928_v30 = vsub.s32 1, %v5914_v26 }
 0x153   : > { %3482 = vmatprep.subr.bf16.mxu0 %v5352_v31  ;;  %3564 = vmatprep.subr.bf16.mxu1 %v5355_v32  ;;  %v5931_v31 = vsub.s32 3, %v5914_v26 }
 0x154   : > { %v825_v32 = vrot.slane %v5922_v28, %v5917_v27 }
 0x156   : > { %3483 = vmatpush1.bf16.msra.mxu0 %v5350_v33  ;;  %3565 = vmatpush1.bf16.msra.mxu1 %v5353_v15  ;;  %v833_v33 = vrot.slane %v5922_v28, %v5925_v29  ;;  %v829_v15 = vrot.slane %v5922_v28, %v5928_v30 }
 0x157   : > { %3484 = vmatprep.subr.bf16.mxu0 %v5358_v34  ;;  %3566 = vmatprep.subr.bf16.mxu1 %v5361_v35  ;;  %v837_v34 = vrot.slane %v5922_v28, %v5931_v31 }
 0x15a   : > { %3485 = vmatpush1.bf16.msra.mxu0 %v5356_v36  ;;  %3567 = vmatpush1.bf16.msra.mxu1 %v5359_v24 }
 0x15b   : > { %3486 = vmatprep.subr.bf16.mxu0 %v5364_v37  ;;  %3568 = vmatprep.subr.bf16.mxu1 %v5367_v38 }
 0x15e   : > { %3487 = vmatpush1.bf16.msra.mxu0 %v5362_v39  ;;  %3569 = vmatpush1.bf16.msra.mxu1 %v5365_v40 }
 0x15f   : > { %3488 = vmatprep.subr.bf16.mxu0 %v5370_v41  ;;  %3570 = vmatprep.subr.bf16.mxu1 %v5373_v42 }
 0x162   : > { %3489 = vmatpush1.bf16.msra.mxu0 %v5368_v43  ;;  %3571 = vmatpush1.bf16.msra.mxu1 %v5371_v44 }
 0x163   : > { %3490 = vmatprep.subr.bf16.mxu0 %v5376_v45  ;;  %3572 = vmatprep.subr.bf16.mxu1 %v5379_v46 }
 0x166   : > { %3491 = vmatpush1.bf16.msra.mxu0 %v5374_v12  ;;  %3573 = vmatpush1.bf16.msra.mxu1 %v5377_v47 }
 0x167   : > { %3492 = vmatprep.subr.bf16.mxu0 %v5382_v48  ;;  %3574 = vmatprep.subr.bf16.mxu1 %v5385_v49 }
 0x16a   : > { %3493 = vmatpush1.bf16.msra.mxu0 %v5380_v50  ;;  %3575 = vmatpush1.bf16.msra.mxu1 %v5383_v51 }
 0x16b   : > { %3494 = vmatprep.subr.bf16.mxu0 %v5388_v57  ;;  %3576 = vmatprep.subr.bf16.mxu1 %v5391_v52 }
 0x16e   : > { %3495 = vmatpush1.bf16.msra.mxu0 %v5386_v54  ;;  %3577 = vmatpush1.bf16.msra.mxu1 %v5389_v55 }
 0x16f   : > { %3496 = vmatprep.subr.bf16.mxu0 %v5394_v53  ;;  %3578 = vmatprep.subr.bf16.mxu1 %v5397_v56 }
 0x172   : > { %3497 = vmatpush1.bf16.msra.mxu0 %v5392_v58  ;;  %3579 = vmatpush1.bf16.msra.mxu1 %v5395_v59 }
 0x173   : > { %3498 = vmatprep.subr.bf16.mxu0 %v5400_v60  ;;  %3580 = vmatprep.subr.bf16.mxu1 %v5403_v61 }
 0x176   : > { %3499 = vmatpush1.bf16.msra.mxu0 %v5398_v62  ;;  %3581 = vmatpush1.bf16.msra.mxu1 %v5401_v63 }
 0x177   : > { %3500 = vmatprep.subr.bf16.mxu0 %v5406_v0  ;;  %3582 = vmatprep.subr.bf16.mxu1 %v5409_v1 }
 0x17a   : > { %3501 = vmatpush1.bf16.msra.mxu0 %v5404_v2  ;;  %3583 = vmatpush1.bf16.msra.mxu1 %v5407_v3 }
 0x17b   : > { %3502 = vmatprep.subr.bf16.mxu0 %v5412_v4  ;;  %3584 = vmatprep.subr.bf16.mxu1 %v5415_v5 }
 0x17e   : > { %3503 = vmatpush1.bf16.msra.mxu0 %v5410_v6  ;;  %3585 = vmatpush1.bf16.msra.mxu1 %v5413_v7 }
 0x17f   : > { %3504 = vmatprep.subr.bf16.mxu0 %v5418_v8  ;;  %3586 = vmatprep.subr.bf16.mxu1 %v5421_v9 }
 0x182   : > { %3505 = vmatpush1.bf16.msra.mxu0 %v5416_v10  ;;  %3587 = vmatpush1.bf16.msra.mxu1 %v5419_v11 }
 0x183   : > { %3506 = vmatprep.subr.bf16.mxu0 %v5424_v13  ;;  %3588 = vmatprep.subr.bf16.mxu1 %v5427_v14 }
 0x186   : > { %3507 = vmatpush1.bf16.msra.mxu0 %v5422_v16  ;;  %3589 = vmatpush1.bf16.msra.mxu1 %v5425_v17 }
 0x187   : > { %3508 = vmatprep.subr.bf16.mxu0 %v5430_v18  ;;  %3590 = vmatprep.subr.bf16.mxu1 %v5433_v19 }
 0x18a   : > { %3509 = vmatpush1.bf16.msra.mxu0 %v5428_v20  ;;  %3591 = vmatpush1.bf16.msra.mxu1 %v5431_v21 }
 0x18b   : > { %3519 = vmatprep.subr.bf16.mxu0 %v5436_v22  ;;  %3601 = vmatprep.subr.bf16.mxu1 %v5439_v23 }
 0x1a0   : > { %v2231_v35 = vpop.f32.mrb[0].mxu0  ;;  %v2313_v24 = vpop.f32.mrb[0].mxu1 }
 0x1a1   : > { %v5941_v36 = vadd.f32 %v2231_v35, %v825_v32  ;;  %v2233_v37 = vpop.f32.mrb[1].mxu0  ;;  %v5943_v38 = vadd.f32 %v2313_v24, %v833_v33  ;;  %v2315_v40 = vpop.f32.mrb[1].mxu1 }
 0x1a2   : > { %v5945_v39 = vadd.f32 %v2233_v37, %v829_v15  ;;  %v2235_v41 = vpop.f32.mrb[2].mxu0  ;;  %v5950_v44 = vadd.f32 %v2315_v40, %v837_v34  ;;  %v2317_v45 = vpop.f32.mrb[2].mxu1 }
 0x1a3   : > { %v2486_v42 = vrot.slane %v5941_v36, 4  ;;  %v2514_v43 = vmul.f32 %v5941_v36, %v5941_v36  ;;  %v2236_v46 = vpop.f32.mrb[3].mxu0  ;;  %v2498_v12 = vrot.slane %v5943_v38, 4  ;;  %v2516_v47 = vmul.f32 %v5943_v38, %v5943_v38  ;;  %v2318_v50 = vpop.f32.mrb[3].mxu1 }
 0x1a4   : > { %v2492_v48 = vrot.slane %v5945_v39, 4  ;;  %v2515_v49 = vmul.f32 %v5945_v39, %v5945_v39  ;;  %v2504_v52 = vrot.slane %v5950_v44, 4  ;;  %v2517_v54 = vmul.f32 %v5950_v44, %v5950_v44 }
 0x1a5   : > { %v2487_v51 = vadd.f32 %v5941_v36, %v2486_v42  ;;  %v2518_v57 = vrot.slane %v2514_v43, 4  ;;  %v2499_v55 = vadd.f32 %v5943_v38, %v2498_v12  ;;  %v2530_v53 = vrot.slane %v2516_v47, 4 }
 0x1a6   : > { %v2493_v56 = vadd.f32 %v5945_v39, %v2492_v48  ;;  %v2524_v58 = vrot.slane %v2515_v49, 4  ;;  %v2505_v61 = vadd.f32 %v5950_v44, %v2504_v52  ;;  %v2536_v62 = vrot.slane %v2517_v54, 4 }
 0x1a7   : > { %v2488_v59 = vrot.slane %v2487_v51, 2  ;;  %v2519_v60 = vadd.f32 %v2518_v57, %v2514_v43  ;;  %v2500_v63 = vrot.slane %v2499_v55, 2  ;;  %v2531_v0 = vadd.f32 %v2530_v53, %v2516_v47 }
 0x1a8   : > { %v2494_v1 = vrot.slane %v2493_v56, 2  ;;  %v2525_v2 = vadd.f32 %v2524_v58, %v2515_v49  ;;  %v2506_v5 = vrot.slane %v2505_v61, 2  ;;  %v2537_v6 = vadd.f32 %v2536_v62, %v2517_v54 }
 0x1a9   : > { %v2489_v3 = vadd.f32 %v2488_v59, %v2487_v51  ;;  %v2520_v4 = vrot.slane %v2519_v60, 2  ;;  %v2501_v7 = vadd.f32 %v2500_v63, %v2499_v55  ;;  %v2532_v8 = vrot.slane %v2531_v0, 2 }
 0x1aa   : > { %v2495_v9 = vadd.f32 %v2494_v1, %v2493_v56  ;;  %v2526_v10 = vrot.slane %v2525_v2, 2  ;;  %v2507_v14 = vadd.f32 %v2506_v5, %v2505_v61  ;;  %v2538_v16 = vrot.slane %v2537_v6, 2 }
 0x1ab   : > { %v2490_v11 = vrot.slane %v2489_v3, 1  ;;  %v2521_v13 = vadd.f32 %v2520_v4, %v2519_v60  ;;  %v2502_v17 = vrot.slane %v2501_v7, 1  ;;  %v2533_v18 = vadd.f32 %v2532_v8, %v2531_v0 }
 0x1ac   : > { %v2496_v19 = vrot.slane %v2495_v9, 1  ;;  %v2527_v20 = vadd.f32 %v2526_v10, %v2525_v2  ;;  %v2508_v23 = vrot.slane %v2507_v14, 1  ;;  %v2539_v32 = vadd.f32 %v2538_v16, %v2537_v6 }
 0x1ad   : > { %v2491_v21 = vadd.f32 %v2490_v11, %v2489_v3  ;;  %v2522_v22 = vrot.slane %v2521_v13, 1  ;;  %v2503_v33 = vadd.f32 %v2502_v17, %v2501_v7  ;;  %v2534_v15 = vrot.slane %v2533_v18, 1 }
 0x1ae   : > { %v2497_v34 = vadd.f32 %v2496_v19, %v2495_v9  ;;  %v2528_v35 = vrot.slane %v2527_v20, 1  ;;  %v2509_v40 = vadd.f32 %v2508_v23, %v2507_v14  ;;  %v2540_v41 = vrot.slane %v2539_v32, 1  ;;  %v2484_v19 = vld [vmem:[%s6291_s3] sm:$0xf] }
 0x1af   : > { %v2510_v24 = vmul.f32 0.125, %v2491_v21  ;;  %v2523_v37 = vadd.f32 %v2522_v22, %v2521_v13  ;;  %v2512_v42 = vmul.f32 0.125, %v2503_v33  ;;  %v2535_v43 = vadd.f32 %v2534_v15, %v2533_v18 }
 0x1b0   : > { %v2529_v45 = vadd.f32 %v2528_v35, %v2527_v20  ;;  %v2511_v46 = vmul.f32 0.125, %v2497_v34  ;;  %v2513_v48 = vmul.f32 0.125, %v2509_v40  ;;  %v2541_v49 = vadd.f32 %v2540_v41, %v2539_v32 }
 0x1b1   : > { %v2542_v12 = vmul.f32 0.125, %v2523_v37  ;;  %v2546_v47 = vmul.f32 %v2510_v24, %v2510_v24  ;;  %v2544_v50 = vmul.f32 0.125, %v2535_v43  ;;  %v2548_v51 = vmul.f32 %v2512_v42, %v2512_v42 }
 0x1b2   : > { %v2543_v57 = vmul.f32 0.125, %v2529_v45  ;;  %v2547_v52 = vmul.f32 %v2511_v46, %v2511_v46  ;;  %v2545_v55 = vmul.f32 0.125, %v2541_v49  ;;  %v2549_v53 = vmul.f32 %v2513_v48, %v2513_v48 }
 0x1b3   : > { %v2550_v54 = vsub.f32 %v2542_v12, %v2546_v47  ;;  %v2552_v56 = vsub.f32 %v2544_v50, %v2548_v51  ;;  %v5697_v4 = vmov 1966171168  }
 0x1b4   : > { %v2551_v58 = vsub.f32 %v2543_v57, %v2547_v52  ;;  %v2553_v60 = vsub.f32 %v2545_v55, %v2549_v53  ;;  %v2573_v5 = vunpack.c.l.s4 %v5697_v4  ;;  %v5451_v4 = vld [vmem:[#allocation4 + $0x24c] ss:$16 sps:$4 sm:$0xff]  }
 0x1b5   : > { %v2554_v59 = vmax.f32 %v2550_v54, 0.0  ;;  %v2556_v61 = vmax.f32 %v2552_v56, 0.0 }
 0x1b6   : > { %v2555_v62 = vmax.f32 %v2551_v58, 0.0  ;;  %v2557_v0 = vmax.f32 %v2553_v60, 0.0  ;;  %v2574_v6 = vunpack.c.0.s8 %v2573_v5  ;;  %v5437_v60 = vld [vmem:[#allocation4 + $0x208] ss:$16 sps:$4 sm:$0xff]   ;;  %v5446_v5 = vld [vmem:[#allocation4 + $0x240] ss:$16 sps:$4 sm:$0xff]  }
 0x1b7   : > { %v2558_v63 = vadd.f32 1e-05, %v2554_v59  ;;  %v2560_v1 = vadd.f32 1e-05, %v2556_v61  ;;  %v5434_v59 = vld [vmem:[#allocation4 + $0x200] ss:$16 sps:$4 sm:$0xff]  }
 0x1b8   : > { %v2559_v2 = vadd.f32 1e-05, %v2555_v62  ;;  %v2561_v3 = vadd.f32 1e-05, %v2557_v0  ;;  %v5966_v9 = vsub.s32 %v2574_v6, %v5914_v26  ;;  %v5442_v62 = vld [vmem:[#allocation4 + $0x224] ss:$16 sps:$4 sm:$0xff]  }
 0x1b9   : > { %5594 = vrsqrt.f32 %v2558_v63  ;;  %v5445_v63 = vld [vmem:[#allocation4 + $0x22c] ss:$16 sps:$4 sm:$0xff]   ;;  %v5449_v6 = vld [vmem:[#allocation4 + $0x248] ss:$16 sps:$4 sm:$0xff]  }
 0x1ba   : > { %5596 = vrsqrt.f32 %v2560_v1  ;;  %v5440_v1 = vld [vmem:[#allocation4 + $0x220] ss:$16 sps:$4 sm:$0xff]  }
 0x1bb   : > { %5598 = vrsqrt.f32 %v2561_v3  ;;  %v5448_v3 = vld [vmem:[#allocation4 + $0x244] ss:$16 sps:$4 sm:$0xff]  }
 0x1bc   : > { %5600 = vrsqrt.f32 %v2559_v2  ;;  %v5443_v2 = vld [vmem:[#allocation4 + $0x228] ss:$16 sps:$4 sm:$0xff]  }
 0x1c3   : > { %v5595_v7 = vpop.eup %5594 }
 0x1c4   : > { %v5597_v8 = vpop.eup %5596 }
 0x1c5   : > { %v5599_v10 = vpop.eup %5598 }
 0x1c6   : > { %v5601_v11 = vpop.eup %5600  ;;  %v2571_v13 = vcombine.low %v5597_v8, %v5599_v10  ;;  %v5457_v8 = vld [vmem:[#allocation4 + $0x26c] ss:$16 sps:$4 sm:$0xff]   ;;  %v5452_v10 = vld [vmem:[#allocation4 + $0x260] ss:$16 sps:$4 sm:$0xff]  }
 0x1c7   : > { %v2570_v14 = vcombine.low %v5595_v7, %v5601_v11  ;;  %v5454_v7 = vld [vmem:[#allocation4 + $0x264] ss:$16 sps:$4 sm:$0xff]   ;;  %v5455_v11 = vld [vmem:[#allocation4 + $0x268] ss:$16 sps:$4 sm:$0xff]  }
 0x1c8   : > { %v2585_v16 = vrot.slane %v2571_v13, %v5966_v9  ;;  %v5460_v13 = vld [vmem:[#allocation4 + $0x284] ss:$16 sps:$4 sm:$0xff]  }
 0x1c9   : > { %v2578_v17 = vrot.slane %v2570_v14, %v5966_v9  ;;  %v5463_v14 = vld [vmem:[#allocation4 + $0x28c] ss:$16 sps:$4 sm:$0xff]  }
 0x1cb   : > { %v2586_v18 = vcombine.low %v2578_v17, %v2585_v16  ;;  %v5458_v16 = vld [vmem:[#allocation4 + $0x280] ss:$16 sps:$4 sm:$0xff]   ;;  %v5461_v17 = vld [vmem:[#allocation4 + $0x288] ss:$16 sps:$4 sm:$0xff]  }
 0x1cd   : > { %v2593_v20 = vrot.slane %v2586_v18, %v5966_v9  ;;  %v5466_v18 = vld [vmem:[#allocation4 + $0x2a4] ss:$16 sps:$4 sm:$0xff]  }
 0x1cf   : > { %v2595_v21 = vmul.f32 %v2593_v20, %v2484_v19  ;;  %v5469_v19 = vld [vmem:[#allocation4 + $0x2ac] ss:$16 sps:$4 sm:$0xff]   ;;  %v5464_v20 = vld [vmem:[#allocation4 + $0x2a0] ss:$16 sps:$4 sm:$0xff]  }
 0x1d1   : > { %v2600_v22 = vrot.slane %v2595_v21, %v5917_v27  ;;  %v2604_v23 = vrot.slane %v2595_v21, %v5928_v30  ;;  %v2608_v32 = vrot.slane %v2595_v21, %v5925_v29  ;;  %v2612_v33 = vrot.slane %v2595_v21, %v5931_v31  ;;  %v5467_v21 = vld [vmem:[#allocation4 + $0x2a8] ss:$16 sps:$4 sm:$0xff]  }
 0x1d3   : > { %v2617_v15 = vmul.f32 %v2600_v22, %v2510_v24  ;;  %v2618_v34 = vmul.f32 %v2604_v23, %v2511_v46  ;;  %v2619_v35 = vmul.f32 %v2608_v32, %v2512_v42  ;;  %v2620_v37 = vmul.f32 %v2612_v33, %v2513_v48  ;;  %v2485_v24 = vld [vmem:[%s6292_s4] sm:$0xf] }
 0x1d4   : > { %v2652_v40 = vmul.f32 %v5945_v39, %v2604_v23  ;;  %v2651_v41 = vmul.f32 %v5941_v36, %v2600_v22  ;;  %v2654_v43 = vmul.f32 %v5950_v44, %v2612_v33  ;;  %v2653_v45 = vmul.f32 %v5943_v38, %v2608_v32  ;;  %v5472_v22 = vld [vmem:[#allocation4 + $0x2c4] ss:$16 sps:$4 sm:$0xff]   ;;  %v5475_v23 = vld [vmem:[#allocation4 + $0x2cc] ss:$16 sps:$4 sm:$0xff]   ;;  %v5470_v32 = vld [vmem:[#allocation4 + $0x2c0] ss:$16 sps:$4 sm:$0xff]  }
 0x1d5   : > { %v2625_v12 = vcombine.low %v2617_v15, %v2618_v34  ;;  %v2626_v47 = vcombine.low %v2619_v35, %v2620_v37  ;;  %v5473_v33 = vld [vmem:[#allocation4 + $0x2c8] ss:$16 sps:$4 sm:$0xff]   ;;  %v5478_v15 = vld [vmem:[#allocation4 + $0x2e4] ss:$16 sps:$4 sm:$0xff]   ;;  %v5481_v34 = vld [vmem:[#allocation4 + $0x2ec] ss:$16 sps:$4 sm:$0xff]  }
 0x1d6   : > { %v5476_v35 = vld [vmem:[#allocation4 + $0x2e0] ss:$16 sps:$4 sm:$0xff]   ;;  %v5479_v37 = vld [vmem:[#allocation4 + $0x2e8] ss:$16 sps:$4 sm:$0xff]  }
 0x1d7   : > { %v2633_v49 = vrot.slane %v2625_v12, %v5966_v9  ;;  %v2640_v50 = vrot.slane %v2626_v47, %v5966_v9  ;;  %v5490_v12 = vld [vmem:[#allocation4 + $0x324] ss:$16 sps:$4 sm:$0xff]   ;;  %v5493_v47 = vld [vmem:[#allocation4 + $0x32c] ss:$16 sps:$4 sm:$0xff]  }
 0x1d9   : > { %v2641_v51 = vcombine.low %v2633_v49, %v2640_v50  ;;  %v5488_v49 = vld [vmem:[#allocation4 + $0x320] ss:$16 sps:$4 sm:$0xff]   ;;  %v5491_v50 = vld [vmem:[#allocation4 + $0x328] ss:$16 sps:$4 sm:$0xff]  }
 0x1db   : > { %v2648_v42 = vrot.slane %v2641_v51, %v5966_v9  ;;  %v5496_v51 = vld [vmem:[#allocation4 + $0x344] ss:$16 sps:$4 sm:$0xff]  }
 0x1dd   : > { %v2650_v39 = vsub.f32 %v2485_v24, %v2648_v42  ;;  %v5499_v24 = vld [vmem:[#allocation4 + $0x34c] ss:$16 sps:$4 sm:$0xff]   ;;  %v5494_v42 = vld [vmem:[#allocation4 + $0x340] ss:$16 sps:$4 sm:$0xff]  }
 0x1df   : > { %v2663_v36 = vrot.slane %v2650_v39, %v5928_v30  ;;  %v2659_v44 = vrot.slane %v2650_v39, %v5917_v27  ;;  %v2671_v38 = vrot.slane %v2650_v39, %v5931_v31  ;;  %v2667_v46 = vrot.slane %v2650_v39, %v5925_v29  ;;  %v5497_v39 = vld [vmem:[#allocation4 + $0x348] ss:$16 sps:$4 sm:$0xff]  }
 0x1e1   : > { %v2677_v48 = vadd.f32 %v2663_v36, %v2652_v40  ;;  %v2676_v57 = vadd.f32 %v2659_v44, %v2651_v41  ;;  %v2679_v52 = vadd.f32 %v2671_v38, %v2654_v43  ;;  %v5992_v54 = vadd.f32 %v2667_v46, %v2653_v45  ;;  %v5484_v40 = vld [vmem:[#allocation4 + $0x304] ss:$16 sps:$4 sm:$0xff]   ;;  %v5487_v41 = vld [vmem:[#allocation4 + $0x30c] ss:$16 sps:$4 sm:$0xff]   ;;  %v5482_v43 = vld [vmem:[#allocation4 + $0x300] ss:$16 sps:$4 sm:$0xff]  }
 0x1e2   : > { %v5485_v45 = vld [vmem:[#allocation4 + $0x308] ss:$16 sps:$4 sm:$0xff]   ;;  %v5502_v36 = vld [vmem:[#allocation4 + $0x364] ss:$16 sps:$4 sm:$0xff]   ;;  %v5505_v44 = vld [vmem:[#allocation4 + $0x36c] ss:$16 sps:$4 sm:$0xff]  }
 0x1e3   : > { %v2681_v55 = vmax.f32 %v2677_v48, 0.0  ;;  %v2680_v53 = vmax.f32 %v2676_v57, 0.0  ;;  %v2683_v56 = vmax.f32 %v2679_v52, 0.0  ;;  %v5500_v38 = vld [vmem:[#allocation4 + $0x360] ss:$16 sps:$4 sm:$0xff]  }
 0x1e4   : > { %v5503_v46 = vld [vmem:[#allocation4 + $0x368] ss:$16 sps:$4 sm:$0xff]   ;;  %v5508_v48 = vld [vmem:[#allocation4 + $0x384] ss:$16 sps:$4 sm:$0xff]   ;;  %v5511_v57 = vld [vmem:[#allocation4 + $0x38c] ss:$16 sps:$4 sm:$0xff]  }
 0x1e5   : > { %v2685_v58 = vpack.c.bf16 %v2681_v55, %v2681_v55  ;;  %v2684_v61 = vpack.c.bf16 %v2680_v53, %v2680_v53  ;;  %v2687_v0 = vpack.c.bf16 %v2683_v56, %v2683_v56  ;;  %v5506_v52 = vld [vmem:[#allocation4 + $0x380] ss:$16 sps:$4 sm:$0xff]   ;;  %v5509_v55 = vld [vmem:[#allocation4 + $0x388] ss:$16 sps:$4 sm:$0xff]   ;;  %v5514_v53 = vld [vmem:[#allocation4 + $0x3a4] ss:$16 sps:$4 sm:$0xff]  }
 0x1e6   : > { %v5517_v56 = vld [vmem:[#allocation4 + $0x3ac] ss:$16 sps:$4 sm:$0xff]  }
 0x1e7   : > { %3510 = vmatprep.mubr.bf16.mxu0 %v2685_v58  ;;  %3592 = vmatprep.mubr.bf16.mxu1 %v2685_v58  ;;  %v5512_v58 = vld [vmem:[#allocation4 + $0x3a0] ss:$16 sps:$4 sm:$0xff]  }
 0x1e8   : > { %3511 = vmatmul.mubr.bf16.vlgmr.msra.gmra.mrb[8].mxu0 %v2684_v61  ;;  %3593 = vmatmul.mubr.bf16.vlgmr.msra.gmra.mrb[8].mxu1 %v2684_v61  ;;  %v5523_v61 = vld [vmem:[#allocation4 + $0x3cc] ss:$16 sps:$4 sm:$0xff]  }
 0x1e9   : > { %3520 = vmatpush1.bf16.msra.mxu0 %v5434_v59  ;;  %3602 = vmatpush1.bf16.msra.mxu1 %v5437_v60  ;;  %v5515_v59 = vld [vmem:[#allocation4 + $0x3a8] ss:$16 sps:$4 sm:$0xff]   ;;  %v5520_v60 = vld [vmem:[#allocation4 + $0x3c4] ss:$16 sps:$4 sm:$0xff]  }
 0x1ea   : > { %3551 = vmatprep.mubr.bf16.mxu0 %v2687_v0  ;;  %3633 = vmatprep.mubr.bf16.mxu1 %v2687_v0  ;;  %v5526_v0 = vld [vmem:[#allocation4 + $0x3e4] ss:$16 sps:$4 sm:$0xff]  }
 0x1eb   : > { %3521 = vmatprep.subr.bf16.mxu0 %v5442_v62  ;;  %3603 = vmatprep.subr.bf16.mxu1 %v5445_v63  ;;  %v5518_v62 = vld [vmem:[#allocation4 + $0x3c0] ss:$16 sps:$4 sm:$0xff]   ;;  %v5521_v63 = vld [vmem:[#allocation4 + $0x3c8] ss:$16 sps:$4 sm:$0xff]  }
 0x1ed   : > { %3522 = vmatpush1.bf16.msra.mxu0 %v5440_v1  ;;  %3604 = vmatpush1.bf16.msra.mxu1 %v5443_v2  ;;  %v5529_v1 = vld [vmem:[#allocation4 + $0x3ec] ss:$16 sps:$4 sm:$0xff]  }
 0x1ee   : > { %3523 = vmatprep.subr.bf16.mxu0 %v5448_v3  ;;  %3605 = vmatprep.subr.bf16.mxu1 %v5451_v4  ;;  %v5524_v3 = vld [vmem:[#allocation4 + $0x3e0] ss:$16 sps:$4 sm:$0xff]   ;;  %v5527_v4 = vld [vmem:[#allocation4 + $0x3e8] ss:$16 sps:$4 sm:$0xff]  }
 0x1f1   : > { %3524 = vmatpush1.bf16.msra.mxu0 %v5446_v5  ;;  %3606 = vmatpush1.bf16.msra.mxu1 %v5449_v6 }
 0x1f2   : > { %3525 = vmatprep.subr.bf16.mxu0 %v5454_v7  ;;  %3607 = vmatprep.subr.bf16.mxu1 %v5457_v8  ;;  %v2682_v7 = vmax.f32 %v5992_v54, 0.0  ;;  %v5532_v54 = vld [vmem:[%s6297_s9] sm:$0xff]  }
 0x1f5   : > { %3526 = vmatpush1.bf16.msra.mxu0 %v5452_v10  ;;  %3608 = vmatpush1.bf16.msra.mxu1 %v5455_v11 }
 0x1f6   : > { %3527 = vmatprep.subr.bf16.mxu0 %v5460_v13  ;;  %3609 = vmatprep.subr.bf16.mxu1 %v5463_v14 }
 0x1f9   : > { %3528 = vmatpush1.bf16.msra.mxu0 %v5458_v16  ;;  %3610 = vmatpush1.bf16.msra.mxu1 %v5461_v17  ;;  %v2686_v16 = vpack.c.bf16 %v2682_v7, %v2682_v7  ;;  %v5530_v17 = vld [vmem:[%s6297_s9 + $0x40] sm:$0xff]  }
 0x1fa   : > { %3529 = vmatprep.subr.bf16.mxu0 %v5466_v18  ;;  %3611 = vmatprep.subr.bf16.mxu1 %v5469_v19  ;;  %v5531_v18 = vld [vmem:[%s6297_s9 + $0xc0] sm:$0xff]  }
 0x1fb   : > { %v5533_v19 = vld [vmem:[%s6297_s9 + $0x80] sm:$0xff]  }
 0x1fd   : > { %3530 = vmatpush1.bf16.msra.mxu0 %v5464_v20  ;;  %3612 = vmatpush1.bf16.msra.mxu1 %v5467_v21  ;;  %v5534_v20 = vld [vmem:[%s6297_s9 + $0x48] sm:$0xff]  }
 0x1fe   : > { %3531 = vmatprep.subr.bf16.mxu0 %v5472_v22  ;;  %3613 = vmatprep.subr.bf16.mxu1 %v5475_v23  ;;  %v5535_v21 = vld [vmem:[%s6297_s9 + $0xc8] sm:$0xff]  }
 0x1ff   : > { %v5536_v22 = vld [vmem:[%s6297_s9 + $0x8] sm:$0xff]  }
 0x200   : > { %v5537_v23 = vld [vmem:[%s6297_s9 + $0x88] sm:$0xff]  }
 0x201   : > { %3532 = vmatpush1.bf16.msra.mxu0 %v5470_v32  ;;  %3614 = vmatpush1.bf16.msra.mxu1 %v5473_v33  ;;  %v5538_v32 = vld [vmem:[%s6297_s9 + $0x50] sm:$0xff]  }
 0x202   : > { %3533 = vmatprep.subr.bf16.mxu0 %v5478_v15  ;;  %3615 = vmatprep.subr.bf16.mxu1 %v5481_v34  ;;  %v5539_v33 = vld [vmem:[%s6297_s9 + $0xd0] sm:$0xff]  }
 0x203   : > { %v5540_v15 = vld [vmem:[%s6297_s9 + $0x10] sm:$0xff]  }
 0x204   : > { %v5541_v34 = vld [vmem:[%s6297_s9 + $0x90] sm:$0xff]  }
 0x205   : > { %3534 = vmatpush1.bf16.msra.mxu0 %v5476_v35  ;;  %3616 = vmatpush1.bf16.msra.mxu1 %v5479_v37  ;;  %v5542_v35 = vld [vmem:[%s6297_s9 + $0x58] sm:$0xff]  }
 0x206   : > { %3535 = vmatprep.subr.bf16.mxu0 %v5484_v40  ;;  %3617 = vmatprep.subr.bf16.mxu1 %v5487_v41  ;;  %v5543_v37 = vld [vmem:[%s6297_s9 + $0xd8] sm:$0xff]  }
 0x207   : > { %v5544_v40 = vld [vmem:[%s6297_s9 + $0x18] sm:$0xff]  }
 0x208   : > { %v5545_v41 = vld [vmem:[%s6297_s9 + $0x98] sm:$0xff]  }
 0x209   : > { %3536 = vmatpush1.bf16.msra.mxu0 %v5482_v43  ;;  %3618 = vmatpush1.bf16.msra.mxu1 %v5485_v45  ;;  %v5546_v43 = vld [vmem:[%s6297_s9 + $0x60] sm:$0xff]  }
 0x20a   : > { %3537 = vmatprep.subr.bf16.mxu0 %v5490_v12  ;;  %3619 = vmatprep.subr.bf16.mxu1 %v5493_v47  ;;  %v5547_v45 = vld [vmem:[%s6297_s9 + $0xe0] sm:$0xff]  }
 0x20b   : > { %v5548_v12 = vld [vmem:[%s6297_s9 + $0x20] sm:$0xff]  }
 0x20c   : > { %v5549_v47 = vld [vmem:[%s6297_s9 + $0xa0] sm:$0xff]  }
 0x20d   : > { %3538 = vmatpush1.bf16.msra.mxu0 %v5488_v49  ;;  %3620 = vmatpush1.bf16.msra.mxu1 %v5491_v50  ;;  %v5550_v49 = vld [vmem:[%s6297_s9 + $0x68] sm:$0xff]  }
 0x20e   : > { %3539 = vmatprep.subr.bf16.mxu0 %v5496_v51  ;;  %3621 = vmatprep.subr.bf16.mxu1 %v5499_v24  ;;  %v5551_v50 = vld [vmem:[%s6297_s9 + $0xe8] sm:$0xff]  }
 0x20f   : > { %v5552_v51 = vld [vmem:[%s6297_s9 + $0x28] sm:$0xff]  }
 0x210   : > { %v5553_v24 = vld [vmem:[%s6297_s9 + $0xa8] sm:$0xff]  }
 0x211   : > { %3540 = vmatpush1.bf16.msra.mxu0 %v5494_v42  ;;  %3622 = vmatpush1.bf16.msra.mxu1 %v5497_v39  ;;  %v5554_v42 = vld [vmem:[%s6297_s9 + $0x70] sm:$0xff]  }
 0x212   : > { %3541 = vmatprep.subr.bf16.mxu0 %v5502_v36  ;;  %3623 = vmatprep.subr.bf16.mxu1 %v5505_v44  ;;  %v5555_v39 = vld [vmem:[%s6297_s9 + $0xf0] sm:$0xff]  }
 0x213   : > { %v5556_v36 = vld [vmem:[%s6297_s9 + $0x30] sm:$0xff]  }
 0x214   : > { %v5557_v44 = vld [vmem:[%s6297_s9 + $0xb0] sm:$0xff]  }
 0x215   : > { %3542 = vmatpush1.bf16.msra.mxu0 %v5500_v38  ;;  %3624 = vmatpush1.bf16.msra.mxu1 %v5503_v46  ;;  %v5558_v38 = vld [vmem:[%s6297_s9 + $0x78] sm:$0xff]  }
 0x216   : > { %3543 = vmatprep.subr.bf16.mxu0 %v5508_v48  ;;  %3625 = vmatprep.subr.bf16.mxu1 %v5511_v57  ;;  %v5559_v46 = vld [vmem:[%s6297_s9 + $0xf8] sm:$0xff]  }
 0x217   : > { %v5560_v48 = vld [vmem:[%s6297_s9 + $0x38] sm:$0xff]  }
 0x218   : > { %v5561_v57 = vld [vmem:[%s6297_s9 + $0xb8] sm:$0xff]  }
 0x219   : > { %3544 = vmatpush1.bf16.msra.mxu0 %v5506_v52  ;;  %3626 = vmatpush1.bf16.msra.mxu1 %v5509_v55  ;;  %v5562_v52 = vld [vmem:[%s6301_s13 + $0x40] sm:$0xff]  }
 0x21a   : > { %3545 = vmatprep.subr.bf16.mxu0 %v5514_v53  ;;  %3627 = vmatprep.subr.bf16.mxu1 %v5517_v56  ;;  %v5563_v55 = vld [vmem:[%s6301_s13 + $0xc0] sm:$0xff]  }
 0x21b   : > { %v2816_v53 = vld [vmem:[%s6294_s6] sm:$0xf] }
 0x21c   : > { %v2821_v56 = vrot.slane %v2816_v53, %v5917_v27 }
 0x21d   : > { %3546 = vmatpush1.bf16.msra.mxu0 %v5512_v58  ;;  %3628 = vmatpush1.bf16.msra.mxu1 %v5515_v59  ;;  %v2829_v58 = vrot.slane %v2816_v53, %v5925_v29  ;;  %v2825_v59 = vrot.slane %v2816_v53, %v5928_v30 }
 0x21e   : > { %3547 = vmatprep.subr.bf16.mxu0 %v5520_v60  ;;  %3629 = vmatprep.subr.bf16.mxu1 %v5523_v61  ;;  %v2833_v60 = vrot.slane %v2816_v53, %v5931_v31 }
 0x220   : > { %v5994_v2 = vpop.f32.mrb[4].mxu0  ;;  %v5996_v5 = vpop.f32.mrb[4].mxu1 }
 0x221   : > { %3548 = vmatpush1.bf16.msra.mxu0 %v5518_v62  ;;  %3630 = vmatpush1.bf16.msra.mxu1 %v5521_v63  ;;  %v5998_v6 = vpop.f32.mrb[5].mxu0  ;;  %v6001_v8 = vpop.f32.mrb[5].mxu1 }
 0x222   : > { %3549 = vmatprep.subr.bf16.mxu0 %v5526_v0  ;;  %3631 = vmatprep.subr.bf16.mxu1 %v5529_v1  ;;  %v2399_v10 = vpop.f32.mrb[6].mxu0  ;;  %v2481_v11 = vpop.f32.mrb[6].mxu1 }
 0x223   : > { %v2400_v13 = vpop.f32.mrb[7].mxu0  ;;  %v2482_v14 = vpop.f32.mrb[7].mxu1 }
 0x225   : > { %3550 = vmatpush1.bf16.msra.mxu0 %v5524_v3  ;;  %3632 = vmatpush1.bf16.msra.mxu1 %v5527_v4 }
 0x226   : > { %5176 = vmatprep.subr.bf16.mxu0 %v5530_v17  ;;  %5198 = vmatprep.subr.bf16.mxu1 %v5531_v18 }
 0x228   : > { %3552 = vmatmul.mubr.bf16.vlgmr.msra.gmra.mrb[8].mxu0 %v2686_v16  ;;  %3634 = vmatmul.mubr.bf16.vlgmr.msra.gmra.mrb[8].mxu1 %v2686_v16 }
 0x229   : > { %5177 = vmatpush3.bf16.msra.mxu0 %v5532_v54  ;;  %5199 = vmatpush3.bf16.msra.mxu1 %v5533_v19 }
 0x22a   : > { %5178 = vmatprep.subr.bf16.mxu0 %v5534_v20  ;;  %5200 = vmatprep.subr.bf16.mxu1 %v5535_v21 }
 0x22d   : > { %5179 = vmatpush3.bf16.msra.mxu0 %v5536_v22  ;;  %5201 = vmatpush3.bf16.msra.mxu1 %v5537_v23 }
 0x22e   : > { %5180 = vmatprep.subr.bf16.mxu0 %v5538_v32  ;;  %5202 = vmatprep.subr.bf16.mxu1 %v5539_v33 }
 0x231   : > { %5181 = vmatpush3.bf16.msra.mxu0 %v5540_v15  ;;  %5203 = vmatpush3.bf16.msra.mxu1 %v5541_v34 }
 0x232   : > { %5182 = vmatprep.subr.bf16.mxu0 %v5542_v35  ;;  %5204 = vmatprep.subr.bf16.mxu1 %v5543_v37 }
 0x235   : > { %5183 = vmatpush3.bf16.msra.mxu0 %v5544_v40  ;;  %5205 = vmatpush3.bf16.msra.mxu1 %v5545_v41 }
 0x236   : > { %5184 = vmatprep.subr.bf16.mxu0 %v5546_v43  ;;  %5206 = vmatprep.subr.bf16.mxu1 %v5547_v45 }
 0x239   : > { %5185 = vmatpush3.bf16.msra.mxu0 %v5548_v12  ;;  %5207 = vmatpush3.bf16.msra.mxu1 %v5549_v47 }
 0x23a   : > { %5186 = vmatprep.subr.bf16.mxu0 %v5550_v49  ;;  %5208 = vmatprep.subr.bf16.mxu1 %v5551_v50 }
 0x23d   : > { %5187 = vmatpush3.bf16.msra.mxu0 %v5552_v51  ;;  %5209 = vmatpush3.bf16.msra.mxu1 %v5553_v24 }
 0x23e   : > { %5188 = vmatprep.subr.bf16.mxu0 %v5554_v42  ;;  %5210 = vmatprep.subr.bf16.mxu1 %v5555_v39 }
 0x241   : > { %5189 = vmatpush3.bf16.msra.mxu0 %v5556_v36  ;;  %5211 = vmatpush3.bf16.msra.mxu1 %v5557_v44 }
 0x242   : > { %5190 = vmatprep.subr.bf16.mxu0 %v5558_v38  ;;  %5212 = vmatprep.subr.bf16.mxu1 %v5559_v46 }
 0x245   : > { %5191 = vmatpush3.bf16.msra.mxu0 %v5560_v48  ;;  %5213 = vmatpush3.bf16.msra.mxu1 %v5561_v57 }
 0x246   : > { %5220 = vmatprep.subr.bf16.mxu0 %v5562_v52  ;;  %5242 = vmatprep.subr.bf16.mxu1 %v5563_v55 }
 0x2fb   : > { %v3553_v61 = vpop.f32.mrb[8].mxu0  ;;  %v3635_v62 = vpop.f32.mrb[8].mxu1 }
 0x2fc   : > { %v6112_v63 = vadd.f32 %v3553_v61, %v2821_v56  ;;  %v6114_v0 = vadd.f32 %v3635_v62, %v2829_v58  ;;  %v3555_v1 = vpop.f32.mrb[9].mxu0  ;;  %v3637_v3 = vpop.f32.mrb[9].mxu1 }
 0x2fd   : > { %v6116_v4 = vadd.f32 %v3555_v1, %v2825_v59  ;;  %v6118_v7 = vadd.f32 %v3637_v3, %v2833_v60  ;;  %v3557_v10 = vpop.f32.mrb[10].mxu0  ;;  %v3639_v11 = vpop.f32.mrb[10].mxu1 }
 0x2fe   : > { %v3644_v13 = vrot.slane %v6112_v63, 4  ;;  %v3672_v14 = vmul.f32 %v6112_v63, %v6112_v63  ;;  %v3656_v16 = vrot.slane %v6114_v0, 4  ;;  %v3674_v17 = vmul.f32 %v6114_v0, %v6114_v0  ;;  %v3558_v18 = vpop.f32.mrb[11].mxu0  ;;  %v3640_v54 = vpop.f32.mrb[11].mxu1 }
 0x2ff   : > { %v3650_v19 = vrot.slane %v6116_v4, 4  ;;  %v3673_v20 = vmul.f32 %v6116_v4, %v6116_v4  ;;  %v3662_v21 = vrot.slane %v6118_v7, 4  ;;  %v3675_v22 = vmul.f32 %v6118_v7, %v6118_v7 }
 0x300   : > { %v3645_v23 = vadd.f32 %v6112_v63, %v3644_v13  ;;  %v3676_v32 = vrot.slane %v3672_v14, 4  ;;  %v3657_v33 = vadd.f32 %v6114_v0, %v3656_v16  ;;  %v3688_v15 = vrot.slane %v3674_v17, 4 }
 0x301   : > { %v3651_v34 = vadd.f32 %v6116_v4, %v3650_v19  ;;  %v3682_v35 = vrot.slane %v3673_v20, 4  ;;  %v3663_v37 = vadd.f32 %v6118_v7, %v3662_v21  ;;  %v3694_v40 = vrot.slane %v3675_v22, 4 }
 0x302   : > { %v3646_v41 = vrot.slane %v3645_v23, 2  ;;  %v3677_v43 = vadd.f32 %v3676_v32, %v3672_v14  ;;  %v3658_v45 = vrot.slane %v3657_v33, 2  ;;  %v3689_v12 = vadd.f32 %v3688_v15, %v3674_v17 }
 0x303   : > { %v3652_v47 = vrot.slane %v3651_v34, 2  ;;  %v3683_v49 = vadd.f32 %v3682_v35, %v3673_v20  ;;  %v3664_v50 = vrot.slane %v3663_v37, 2  ;;  %v3695_v51 = vadd.f32 %v3694_v40, %v3675_v22 }
 0x304   : > { %v3647_v24 = vadd.f32 %v3646_v41, %v3645_v23  ;;  %v3678_v42 = vrot.slane %v3677_v43, 2  ;;  %v3659_v39 = vadd.f32 %v3658_v45, %v3657_v33  ;;  %v3690_v36 = vrot.slane %v3689_v12, 2 }
 0x305   : > { %v3653_v44 = vadd.f32 %v3652_v47, %v3651_v34  ;;  %v3684_v38 = vrot.slane %v3683_v49, 2  ;;  %v3665_v46 = vadd.f32 %v3664_v50, %v3663_v37  ;;  %v3696_v48 = vrot.slane %v3695_v51, 2 }
 0x306   : > { %v3648_v57 = vrot.slane %v3647_v24, 1  ;;  %v3679_v52 = vadd.f32 %v3678_v42, %v3677_v43  ;;  %v3660_v55 = vrot.slane %v3659_v39, 1  ;;  %v3691_v53 = vadd.f32 %v3690_v36, %v3689_v12 }
 0x307   : > { %v3654_v56 = vrot.slane %v3653_v44, 1  ;;  %v3685_v58 = vadd.f32 %v3684_v38, %v3683_v49  ;;  %v3666_v59 = vrot.slane %v3665_v46, 1  ;;  %v3697_v60 = vadd.f32 %v3696_v48, %v3695_v51 }
 0x308   : > { %v3649_v61 = vadd.f32 %v3648_v57, %v3647_v24  ;;  %v3680_v62 = vrot.slane %v3679_v52, 1  ;;  %v3661_v1 = vadd.f32 %v3660_v55, %v3659_v39  ;;  %v3692_v3 = vrot.slane %v3691_v53, 1 }
 0x309   : > { %v3655_v10 = vadd.f32 %v3654_v56, %v3653_v44  ;;  %v3686_v11 = vrot.slane %v3685_v58, 1  ;;  %v3667_v13 = vadd.f32 %v3666_v59, %v3665_v46  ;;  %v3698_v14 = vrot.slane %v3697_v60, 1 }
 0x30a   : > { %v3668_v16 = vmul.f32 0.125, %v3649_v61  ;;  %v3681_v17 = vadd.f32 %v3680_v62, %v3679_v52  ;;  %v3670_v18 = vmul.f32 0.125, %v3661_v1  ;;  %v3693_v54 = vadd.f32 %v3692_v3, %v3691_v53 }
 0x30b   : > { %v3687_v19 = vadd.f32 %v3686_v11, %v3685_v58  ;;  %v3671_v20 = vmul.f32 0.125, %v3667_v13  ;;  %v3699_v21 = vadd.f32 %v3698_v14, %v3697_v60  ;;  %v3669_v22 = vmul.f32 0.125, %v3655_v10  ;;  %v3642_v58 = vld [vmem:[%s6295_s7] sm:$0xf] }
 0x30c   : > { %v3700_v23 = vmul.f32 0.125, %v3681_v17  ;;  %v3704_v32 = vmul.f32 %v3668_v16, %v3668_v16  ;;  %v3702_v33 = vmul.f32 0.125, %v3693_v54  ;;  %v3706_v15 = vmul.f32 %v3670_v18, %v3670_v18 }
 0x30d   : > { %v3701_v34 = vmul.f32 0.125, %v3687_v19  ;;  %v3703_v35 = vmul.f32 0.125, %v3699_v21  ;;  %v3707_v37 = vmul.f32 %v3671_v20, %v3671_v20  ;;  %v3705_v40 = vmul.f32 %v3669_v22, %v3669_v22 }
 0x30e   : > { %v3708_v41 = vsub.f32 %v3700_v23, %v3704_v32  ;;  %v3710_v43 = vsub.f32 %v3702_v33, %v3706_v15 }
 0x30f   : > { %v3711_v45 = vsub.f32 %v3703_v35, %v3707_v37  ;;  %v3709_v12 = vsub.f32 %v3701_v34, %v3705_v40  ;;  %v844_v34 = vsub.s32 5, %v5914_v26 }
 0x310   : > { %v3712_v47 = vmax.f32 %v3708_v41, 0.0  ;;  %v3714_v49 = vmax.f32 %v3710_v43, 0.0 }
 0x311   : > { %v3715_v50 = vmax.f32 %v3711_v45, 0.0  ;;  %v3713_v51 = vmax.f32 %v3709_v12, 0.0 }
 0x312   : > { %v3716_v24 = vadd.f32 1e-05, %v3712_v47  ;;  %v3718_v42 = vadd.f32 1e-05, %v3714_v49 }
 0x313   : > { %v3719_v39 = vadd.f32 1e-05, %v3715_v50  ;;  %v3717_v36 = vadd.f32 1e-05, %v3713_v51 }
 0x314   : > { %5602 = vrsqrt.f32 %v3716_v24 }
 0x315   : > { %5604 = vrsqrt.f32 %v3718_v42 }
 0x316   : > { %5606 = vrsqrt.f32 %v3719_v39 }
 0x317   : > { %5608 = vrsqrt.f32 %v3717_v36 }
 0x31e   : > { %v5603_v44 = vpop.eup %5602 }
 0x31f   : > { %v5605_v38 = vpop.eup %5604 }
 0x320   : > { %v5607_v46 = vpop.eup %5606 }
 0x321   : > { %v5609_v48 = vpop.eup %5608  ;;  %v3729_v57 = vcombine.low %v5605_v38, %v5607_v46 }
 0x322   : > { %v3728_v52 = vcombine.low %v5603_v44, %v5609_v48  ;;  %v5567_v44 = vld [vmem:[%s6301_s13 + $0xc8] sm:$0xff]  }
 0x323   : > { %v3743_v55 = vrot.slane %v3729_v57, %v5966_v9  ;;  %v5568_v48 = vld [vmem:[%s6301_s13 + $0x8] sm:$0xff]  }
 0x324   : > { %v3736_v53 = vrot.slane %v3728_v52, %v5966_v9  ;;  %v5569_v57 = vld [vmem:[%s6301_s13 + $0x88] sm:$0xff]   ;;  %v5570_v52 = vld [vmem:[%s6301_s13 + $0x50] sm:$0xff]  }
 0x326   : > { %v3744_v56 = vcombine.low %v3736_v53, %v3743_v55  ;;  %v5571_v55 = vld [vmem:[%s6301_s13 + $0xd0] sm:$0xff]  }
 0x327   : > { %v5572_v53 = vld [vmem:[%s6301_s13 + $0x10] sm:$0xff]  }
 0x328   : > { %v3751_v59 = vrot.slane %v3744_v56, %v5966_v9  ;;  %v5573_v56 = vld [vmem:[%s6301_s13 + $0x90] sm:$0xff]  }
 0x32a   : > { %v3753_v60 = vmul.f32 %v3751_v59, %v3642_v58  ;;  %v5574_v58 = vld [vmem:[%s6301_s13 + $0x58] sm:$0xff]  }
 0x32b   : > { %v5575_v59 = vld [vmem:[%s6301_s13 + $0xd8] sm:$0xff]  }
 0x32c   : > { %v3758_v61 = vrot.slane %v3753_v60, %v5917_v27  ;;  %v3762_v62 = vrot.slane %v3753_v60, %v5928_v30  ;;  %v3766_v1 = vrot.slane %v3753_v60, %v5925_v29  ;;  %v3770_v3 = vrot.slane %v3753_v60, %v5931_v31  ;;  %v5576_v60 = vld [vmem:[%s6301_s13 + $0x18] sm:$0xff]  }
 0x32e   : > { %v3775_v10 = vmul.f32 %v3758_v61, %v3668_v16  ;;  %v3776_v11 = vmul.f32 %v3762_v62, %v3669_v22  ;;  %v3777_v13 = vmul.f32 %v3766_v1, %v3670_v18  ;;  %v3778_v14 = vmul.f32 %v3770_v3, %v3671_v20 }
 0x32f   : > { %v3810_v17 = vmul.f32 %v6116_v4, %v3762_v62  ;;  %v3812_v54 = vmul.f32 %v6118_v7, %v3770_v3  ;;  %v3809_v19 = vmul.f32 %v6112_v63, %v3758_v61  ;;  %v3811_v21 = vmul.f32 %v6114_v0, %v3766_v1  ;;  %v3643_v4 = vld [vmem:[%s6296_s8] sm:$0xf]  ;;  %v5577_v61 = vld [vmem:[%s6301_s13 + $0x98] sm:$0xff]  }
 0x330   : > { %v3783_v23 = vcombine.low %v3775_v10, %v3776_v11  ;;  %v3784_v32 = vcombine.low %v3777_v13, %v3778_v14  ;;  %v852_v16 = vsub.s32 7, %v5914_v26  ;;  %v845_v63 = vrot.slane %v5922_v28, %v844_v34  ;;  %v5578_v62 = vld [vmem:[%s6301_s13 + $0x60] sm:$0xff]   ;;  %v5582_v14 = vld [vmem:[%s6301_s13 + $0x68] sm:$0xff]   ;;  %v5589_v34 = vld [vmem:[%s6301_s13 + $0xb0] sm:$0xff]  }
 0x331   : > { %v5579_v1 = vld [vmem:[%s6301_s13 + $0xe0] sm:$0xff]   ;;  %v840_v11 = vsub.s32 4, %v5914_v26  ;;  %v848_v13 = vsub.s32 6, %v5914_v26  ;;  %v5585_v26 = vld [vmem:[%s6301_s13 + $0xa8] sm:$0xff]  }
 0x332   : > { %v3791_v33 = vrot.slane %v3783_v23, %v5966_v9  ;;  %v3798_v15 = vrot.slane %v3784_v32, %v5966_v9  ;;  %v853_v0 = vrot.slane %v5922_v28, %v852_v16  ;;  %v5269_v41 = vadd.f32 %v5998_v6, %v845_v63  ;;  %v5565_v6 = vld [vmem:[%s6301_s13 + $0x80] sm:$0xff]   ;;  %v5586_v32 = vld [vmem:[%s6301_s13 + $0x70] sm:$0xff]   ;;  %v5592_v63 = vld [vmem:[%s6301_s13 + $0x38] sm:$0xff]  }
 0x333   : > { %v5580_v3 = vld [vmem:[%s6301_s13 + $0x20] sm:$0xff]  }
 0x334   : > { %v3799_v18 = vcombine.low %v3791_v33, %v3798_v15  ;;  %v5271_v43 = vadd.f32 %v6001_v8, %v853_v0  ;;  %v4236_v24 = vmax.f32 %v5269_v41, 0.0  ;;  %v5566_v8 = vld [vmem:[%s6301_s13 + $0x48] sm:$0xff]   ;;  %v5581_v10 = vld [vmem:[%s6301_s13 + $0xa0] sm:$0xff]   ;;  %v5587_v33 = vld [vmem:[%s6301_s13 + $0xf0] sm:$0xff]  }
 0x335   : > { %v5588_v15 = vld [vmem:[%s6301_s13 + $0x30] sm:$0xff]  }
 0x336   : > { %v3806_v7 = vrot.slane %v3799_v18, %v5966_v9  ;;  %v4240_v38 = vpack.c.bf16 %v4236_v24, %v4236_v24 }
 0x338   : > { %v3808_v20 = vsub.f32 %v3643_v4, %v3806_v7  ;;  %v5590_v4 = vld [vmem:[%s6301_s13 + $0x78] sm:$0xff]  }
 0x339   : > { %v5591_v7 = vld [vmem:[%s6301_s13 + $0xf8] sm:$0xff]  }
 0x33a   : > { %v3821_v22 = vrot.slane %v3808_v20, %v5928_v30  ;;  %v3829_v35 = vrot.slane %v3808_v20, %v5931_v31  ;;  %v3817_v37 = vrot.slane %v3808_v20, %v5917_v27  ;;  %v3825_v40 = vrot.slane %v3808_v20, %v5925_v29  ;;  %v5564_v29 = vld [vmem:[%s6301_s13] sm:$0xff]  }
 0x33b   : > { %v4238_v30 = vmax.f32 %v5271_v43, 0.0 }
 0x33c   : > { %v3835_v45 = vadd.f32 %v3821_v22, %v3810_v17  ;;  %v3837_v12 = vadd.f32 %v3829_v35, %v3812_v54  ;;  %v3834_v9 = vadd.f32 %v3817_v37, %v3809_v19  ;;  %v3836_v47 = vadd.f32 %v3825_v40, %v3811_v21  ;;  %v5583_v17 = vld [vmem:[%s6301_s13 + $0xe8] sm:$0xff]   ;;  %v5618_v19 = vld [vmem:[%s6290_s2] sm:$0xff] }
 0x33d   : > { %v4242_v46 = vpack.c.bf16 %v4238_v30, %v4238_v30  ;;  %v5584_v54 = vld [vmem:[%s6301_s13 + $0x28] sm:$0xff]   ;;  %v841_v21 = vrot.slane %v5618_v19, %v840_v11  ;;  %v849_v23 = vrot.slane %v5618_v19, %v848_v13  ;;  %v5107_v40 = vld [vmem:[%s6298_s10] ss:$0 sm:$0xff] }
 0x33e   : > { %v3839_v49 = vmax.f32 %v3835_v45, 0.0  ;;  %v3841_v50 = vmax.f32 %v3837_v12, 0.0  ;;  %v3838_v28 = vmax.f32 %v3834_v9, 0.0  ;;  %v3840_v51 = vmax.f32 %v3836_v47, 0.0 }
 0x33f   : > { %v5268_v16 = vadd.f32 %v5994_v2, %v841_v21  ;;  %v5270_v18 = vadd.f32 %v5996_v5, %v849_v23  ;;  %v5593_v2 = vld [vmem:[%s6301_s13 + $0xb8] sm:$0xff]   ;;  %v4189_v21 = vld [vmem:[%s6299_s11] sm:$0x1] }
 0x340   : > { %v3843_v42 = vpack.c.bf16 %v3839_v49, %v3839_v49  ;;  %v3845_v31 = vpack.c.bf16 %v3841_v50, %v3841_v50  ;;  %v3842_v39 = vpack.c.bf16 %v3838_v28, %v3838_v28  ;;  %v3844_v36 = vpack.c.bf16 %v3840_v51, %v3840_v51 }
 0x341   : > { %v4235_v5 = vmax.f32 %v5268_v16, 0.0  ;;  %v4237_v0 = vmax.f32 %v5270_v18, 0.0 }
 0x342   : > { %4141 = vmatprep.mubr.bf16.mxu0 %v3843_v42  ;;  %4181 = vmatprep.mubr.bf16.mxu1 %v3845_v31 }
 0x343   : > { %4142 = vmatmul.mubr.bf16.vlgmr.msra.gmra.mrb[12].mxu0 %v3842_v39  ;;  %4182 = vmatmul.mubr.bf16.vlgmr.msra.gmra.mrb[12].mxu1 %v3844_v36  ;;  %v4239_v20 = vpack.c.bf16 %v4235_v5, %v4235_v5  ;;  %v4241_v22 = vpack.c.bf16 %v4237_v0, %v4237_v0 }
 0x344   : > { %5221 = vmatpush3.bf16.msra.mxu0 %v5564_v29  ;;  %5243 = vmatpush3.bf16.msra.mxu1 %v5565_v6 }
 0x345   : > { %4538 = vmatprep.mubr.bf16.mxu0 %v4240_v38  ;;  %4578 = vmatprep.mubr.bf16.mxu1 %v4242_v46 }
 0x346   : > { %5222 = vmatprep.subr.bf16.mxu0 %v5566_v8  ;;  %5244 = vmatprep.subr.bf16.mxu1 %v5567_v44 }
 0x348   : > { %5223 = vmatpush3.bf16.msra.mxu0 %v5568_v48  ;;  %5245 = vmatpush3.bf16.msra.mxu1 %v5569_v57 }
 0x349   : > { %5224 = vmatprep.subr.bf16.mxu0 %v5570_v52  ;;  %5246 = vmatprep.subr.bf16.mxu1 %v5571_v55 }
 0x34c   : > { %5225 = vmatpush3.bf16.msra.mxu0 %v5572_v53  ;;  %5247 = vmatpush3.bf16.msra.mxu1 %v5573_v56 }
 0x34d   : > { %5226 = vmatprep.subr.bf16.mxu0 %v5574_v58  ;;  %5248 = vmatprep.subr.bf16.mxu1 %v5575_v59 }
 0x350   : > { %5227 = vmatpush3.bf16.msra.mxu0 %v5576_v60  ;;  %5249 = vmatpush3.bf16.msra.mxu1 %v5577_v61  ;;  %v5140_v61 = vld [vmem:[%s6302_s14] ss:$0 sm:$0xff] }
 0x351   : > { %5228 = vmatprep.subr.bf16.mxu0 %v5578_v62  ;;  %5250 = vmatprep.subr.bf16.mxu1 %v5579_v1 }
 0x354   : > { %5229 = vmatpush3.bf16.msra.mxu0 %v5580_v3  ;;  %5251 = vmatpush3.bf16.msra.mxu1 %v5581_v10  ;;  %v4587_v3 = vand.u32 127, %v822_v25  ;;  %v4190_v25 = vld [vmem:[%s6300_s12] sm:$0x1] }
 0x355   : > { %5230 = vmatprep.subr.bf16.mxu0 %v5582_v14  ;;  %5252 = vmatprep.subr.bf16.mxu1 %v5583_v17 }
 0x356   : > { %vm4588_vm0 = vcmp.lt.s32.totalorder %v4587_v3, 10 }
 0x358   : > { %5231 = vmatpush3.bf16.msra.mxu0 %v5584_v54  ;;  %5253 = vmatpush3.bf16.msra.mxu1 %v5585_v26 }
 0x359   : > { %5232 = vmatprep.subr.bf16.mxu0 %v5586_v32  ;;  %5254 = vmatprep.subr.bf16.mxu1 %v5587_v33 }
 0x35c   : > { %5233 = vmatpush3.bf16.msra.mxu0 %v5588_v15  ;;  %5255 = vmatpush3.bf16.msra.mxu1 %v5589_v34 }
 0x35d   : > { %5234 = vmatprep.subr.bf16.mxu0 %v5590_v4  ;;  %5256 = vmatprep.subr.bf16.mxu1 %v5591_v7 }
 0x360   : > { %5235 = vmatpush3.bf16.msra.mxu0 %v5592_v63  ;;  %5257 = vmatpush3.bf16.msra.mxu1 %v5593_v2 }
 0x363   : > { %4539 = vmatmul.mubr.bf16.vlgmr.msra.gmra.mrb[16].mxu0 %v4239_v20  ;;  %4579 = vmatmul.mubr.bf16.vlgmr.msra.gmra.mrb[16].mxu1 %v4241_v22 }
 0x416   : > { %v5192_v35 = vpop.f32.mrb[12].mxu0  ;;  %v5214_v37 = vpop.f32.mrb[12].mxu1 }
 0x417   : > { %v5193_v41 = vpop.f32.mrb[13].mxu0  ;;  %v5215_v43 = vpop.f32.mrb[13].mxu1 }
 0x418   : > { %v5194_v45 = vadd.f32 %v5193_v41, %v5192_v35  ;;  %v5216_v12 = vadd.f32 %v5215_v43, %v5214_v37  ;;  %v5195_v9 = vpop.f32.mrb[14].mxu0  ;;  %v5217_v47 = vpop.f32.mrb[14].mxu1 }
 0x419   : > { %v5196_v49 = vpop.f32.mrb[15].mxu0  ;;  %v5218_v50 = vpop.f32.mrb[15].mxu1 }
 0x41a   : > { %v4144_v28 = vadd.f32 %v5194_v45, %v5107_v40 }
 0x41c   : > { %v4184_v51 = vadd.f32 %v5216_v12, %v4144_v28 }
 0x41e   : > { %v4191_v24 = vrot.slane %v4184_v51, 4  ;;  %v4198_v30 = vmul.f32 %v4184_v51, %v4184_v51 }
 0x420   : > { %v4192_v42 = vadd.f32 %v4191_v24, %v4184_v51  ;;  %v4199_v31 = vrot.slane %v4198_v30, 4 }
 0x422   : > { %v4193_v39 = vrot.slane %v4192_v42, 2  ;;  %v4200_v36 = vadd.f32 %v4199_v31, %v4198_v30 }
 0x424   : > { %v4194_v29 = vadd.f32 %v4193_v39, %v4192_v42  ;;  %v4201_v6 = vrot.slane %v4200_v36, 2 }
 0x426   : > { %v4202_v8 = vadd.f32 %v4201_v6, %v4200_v36  ;;  %v4195_v44 = vrot.slane %v4194_v29, 1 }
 0x428   : > { %v4203_v38 = vrot.slane %v4202_v8, 1  ;;  %v4196_v46 = vadd.f32 %v4195_v44, %v4194_v29 }
 0x42a   : > { %v4204_v48 = vadd.f32 %v4203_v38, %v4202_v8  ;;  %v4197_v57 = vmul.f32 0.125, %v4196_v46 }
 0x42c   : > { %v4205_v52 = vmul.f32 0.125, %v4204_v48  ;;  %v4206_v55 = vmul.f32 %v4197_v57, %v4197_v57 }
 0x42e   : > { %v4207_v53 = vsub.f32 %v4205_v52, %v4206_v55 }
 0x430   : > { %v4208_v56 = vmax.f32 %v4207_v53, 0.0 }
 0x432   : > { %v4209_v58 = vadd.f32 1e-05, %v4208_v56 }
 0x434   : > { %5610 = vrsqrt.f32 %v4209_v58 }
 0x436   : > { %v5236_v59 = vpop.f32.mrb[16].mxu0  ;;  %v5258_v60 = vpop.f32.mrb[16].mxu1 }
 0x437   : > { %v5237_v62 = vpop.f32.mrb[17].mxu0  ;;  %v5259_v1 = vpop.f32.mrb[17].mxu1 }
 0x438   : > { %v5238_v10 = vadd.f32 %v5237_v62, %v5236_v59  ;;  %v5260_v11 = vadd.f32 %v5259_v1, %v5258_v60  ;;  %v5239_v13 = vpop.f32.mrb[18].mxu0  ;;  %v5261_v14 = vpop.f32.mrb[18].mxu1 }
 0x439   : > { %v5240_v17 = vpop.f32.mrb[19].mxu0  ;;  %v5262_v54 = vpop.f32.mrb[19].mxu1 }
 0x43a   : > { %v4541_v26 = vadd.f32 %v5238_v10, %v5140_v61 }
 0x43c   : > { %v4581_v19 = vadd.f32 %v5260_v11, %v4541_v26 }
 0x43e   : > { %v5611_v23 = vpop.eup %5610  ;;  %v4589_v32 = vsel %vm4588_vm0, %v4581_v19, -1e+30 }
 0x43f   : > { %4590 = vmax.xlane.f32.xlu0 %v4589_v32  ;;  %v4211_v33 = vmul.f32 %v5611_v23, %v4189_v21 }
 0x441   : > { %v4212_v15 = vmul.f32 %v4211_v33, %v4197_v57  ;;  %v4218_v34 = vrot.slane %v4211_v33, %v5917_v27 }
 0x443   : > { %v4213_v16 = vsub.f32 %v4190_v25, %v4212_v15  ;;  %v4220_v18 = vmul.f32 %v4218_v34, %v4184_v51 }
 0x445   : > { %v4225_v4 = vrot.slane %v4213_v16, %v5917_v27 }
 0x447   : > { %v4227_v7 = vadd.f32 %v4225_v4, %v4220_v18 }
 0x449   : > { %v4228_v63 = vmul.f32 %v4227_v7, %v4227_v7 }
 0x44b   : > { %4229 = vadd.xlane.f32.xlu0 %v4228_v63 }
 0x4cc   : > { %v4591_v2 = vpop.xlane.xlu0 %4590 }
 0x4cd   : > { %v4592_v5 = vsub.f32 %v4589_v32, %v4591_v2 }
 0x4cf   : > { %v4593_v0 = vmul.f32 1.442695, %v4592_v5 }
 0x4d1   : > { %5612 = vpow2.f32 %v4593_v0 }
 0x4d8   : > { %v4230_v20 = vpop.xlane.xlu0 %4229 }
 0x4d9   : > { %v4231_v22 = vmax.f32 %v4230_v20, 1e-24 }
 0x4db   : > { %v5613_v35 = vpop.eup %5612  ;;  %5614 = vrsqrt.f32 %v4231_v22 }
 0x4dc   : > { %4595 = vadd.xlane.f32.xlu1 %v5613_v35 }
 0x4e5   : > { %v5615_v37 = vpop.eup %5614 }
 0x4e6   : > { %v4233_v40 = vmul.f32 %v5615_v37, %v4227_v7 }
 0x4e8   : > { %4234 = vst [vmem:[%s556_s20] sm:$0xff] %v4233_v40 }
 0x569   : > { %v4596_v27 = vpop.xlane.xlu1 %4595 }
 0x56a   : > { %5616 = vrcp.f32 %v4596_v27 }
 0x574   : > { %v5617_v41 = vpop.eup %5616 }
 0x575   : > { %v4598_v43 = vmul.f32 %v5617_v41, %v5613_v35 }
 0x577   : > { %4599 = vst [vmem:[%s560_s21] sm:$0xff] %v4598_v43 }
 0x578 PF: > { %s6320_s26 = sld [smem:[#allocation8_spill]] }
 0x57e   : > { %s29_s21 = sadd.s32 1, %s6320_s26  }
 0x57f   : > { %p26_p9 = scmp.ge.s32.totalorder %s29_s21, 4  }
 0x581   :  { %28 = sbr.rel (!%p26_p9) target bundleno = 5 (0x5), region = 131 }
 0x588   :  { %4633 = vsyncpa [#allocation3], 1 }
 0x589   :  { %4635 = vsyncpa [#allocation3 + $0x1], 1 }
 0x58a   :  { %4636 = vsyncpa [#allocation5], 1 }

</bundles_post_ra>
